<compile_context>
chip_gen: v7x
topology: tpu7x:2x2x1
jax: 0.10.0
libtpu: 0.0.40
codegen_flags: <defaults>
</compile_context>

<pallas_src>
import math

import jax
import jax.numpy as jnp
from jax.experimental import pallas as pl
from jax.experimental.pallas import tpu as pltpu

# ---- small synthetic config ----
B = 2          # batch (number of context/response pairs)
S = 8          # sequence length
H = 32         # hidden size
FF = 128       # FFN intermediate size
VOCAB = 100
BS = B * S
LN_EPS = 1e-5
NEG_INF = -1e9
INV_SQRT_H = 1.0 / math.sqrt(H)

# packed big-weight lane-aligned layout (per encoder): (H, W1_WIDTH) bf16
WOFF_QKV = 0        # lanes   0: 96   [Wq | Wk | Wv]
WOFF_FF1 = 128      # lanes 128:256   Wff1 (H, FF)
WOFF_O = 256        # lanes 256:288   Wo
WOFF_POOL = 384     # lanes 384:416   Wpool
W1_WIDTH = 512

# packed small vectors: one vector per sublane row of a (SMALL_ROWS, 128) f32 slab
(R_G_EMB, R_B_EMB, R_BQKV, R_BO, R_G1, R_B1,
 R_BFF1, R_BFF2, R_G2, R_B2, R_BPOOL) = range(11)
SMALL_ROWS = 16

# packed per-encoder data block rows: (BS + 2*B, H)
#   rows 0:BS          flattened raw token embeddings
#   rows BS:BS+B       duplicated CLS-position raw embeddings
#   rows BS+B:BS+2B    combined additive attention bias (B, BS), lane-padded to H
DATA_ROWS = BS + 2 * B


def _layernorm(x, g, b):
    mu = jnp.mean(x, axis=-1, keepdims=True)
    var = jnp.mean((x - mu) * (x - mu), axis=-1, keepdims=True)
    return (x - mu) * jax.lax.rsqrt(var + LN_EPS) * g + b


def _gelu(x):
    # TODO(synk): BERT uses exact erf-GELU; tanh approximation used here.
    c = 0.7978845608028654  # sqrt(2/pi)
    return 0.5 * x * (1.0 + jnp.tanh(c * (x + 0.044715 * x * x * x)))


def _dot_nt(a, b):
    # a (M, K) . b (N, K)^T -> (M, N) without an explicit transpose.
    return jax.lax.dot_general(a, b, (((1,), (1,)), ((), ())),
                               preferred_element_type=jnp.float32)


def biencoder_kernel(data_ref, w1_ref, wff2_ref, small_ref, out_ref):
    """Both encoders + (B,B) dot product + log-softmax loss, one invocation."""

    def vec(e, r, width):
        # lane-aligned (1, width) bias / LN vector from the small slab
        return small_ref[e, r:r + 1, 0:width]

    def encode(e):
        g_emb = vec(e, R_G_EMB, H)
        b_emb = vec(e, R_B_EMB, H)
        bqkv = vec(e, R_BQKV, 3 * H)
        bo = vec(e, R_BO, H)
        g1 = vec(e, R_G1, H)
        b1 = vec(e, R_B1, H)
        bff1 = vec(e, R_BFF1, FF)
        bff2 = vec(e, R_BFF2, H)
        g2 = vec(e, R_G2, H)
        b2 = vec(e, R_B2, H)
        bpool = vec(e, R_BPOOL, H)

        # token rows + duplicated CLS rows (LayerNorm is row-wise, so LN of the
        # duplicated CLS rows == LN of rows 0, S of the token block).
        xa = data_ref[e, 0:BS + B, :]                   # (BS+B, H) f32
        bias = data_ref[e, BS + B:BS + 2 * B, 0:BS]     # (B, BS) combined mask bias

        xa = _layernorm(xa, g_emb, b_emb)
        x_cls = xa[BS:BS + B, :]                        # (B, H)

        # fused QKV matmul on all rows (one MXU push, bf16 in / f32 acc).
        qkv = jnp.dot(xa.astype(jnp.bfloat16),
                      w1_ref[e, :, WOFF_QKV:WOFF_QKV + 3 * H],
                      preferred_element_type=jnp.float32) + bqkv        # (BS+B, 3H)
        k = qkv[0:BS, H:2 * H]                          # (BS, H)
        v = qkv[0:BS, 2 * H:3 * H]                      # (BS, H)
        q = qkv[BS:BS + B, 0:H]                         # (B, H)  CLS queries only

        # attention restricted to the B CLS query rows -> (B, BS) scores.
        # `bias` already contains block-diagonal sequence masking + key padding.
        scores = _dot_nt(q, k) * INV_SQRT_H + bias
        m = jnp.max(scores, axis=-1, keepdims=True)
        ex = jnp.exp(scores - m)
        # approx reciprocal rides the EUP slot (~1e-3 rel err vs exact softmax)
        p = ex * pl.reciprocal(jnp.sum(ex, axis=-1, keepdims=True), approx=True)
        ctxv = jnp.dot(p.astype(jnp.bfloat16), v.astype(jnp.bfloat16),
                       preferred_element_type=jnp.float32)              # (B, H)

        attn = jnp.dot(ctxv.astype(jnp.bfloat16),
                       w1_ref[e, :, WOFF_O:WOFF_O + H],
                       preferred_element_type=jnp.float32) + bo
        h1 = _layernorm(x_cls + attn, g1, b1)                           # (B, H)

        ff = _gelu(jnp.dot(h1.astype(jnp.bfloat16),
                           w1_ref[e, :, WOFF_FF1:WOFF_FF1 + FF],
                           preferred_element_type=jnp.float32) + bff1)  # (B, FF)
        ff = jnp.dot(ff.astype(jnp.bfloat16), wff2_ref[e],
                     preferred_element_type=jnp.float32) + bff2         # (B, H)
        h2 = _layernorm(h1 + ff, g2, b2)

        pooled = jnp.tanh(
            jnp.dot(h2.astype(jnp.bfloat16),
                    w1_ref[e, :, WOFF_POOL:WOFF_POOL + H],
                    preferred_element_type=jnp.float32) + bpool)        # (B, H)
        return pooled

    ctx_vec = encode(0)
    resp_vec = encode(1)

    # dot_product = context_vector @ response_vector.T   (B, B)
    dot = _dot_nt(ctx_vec, resp_vec)

    # loss = mean_i( -log_softmax(dot, -1)[i, i] )
    m = jnp.max(dot, axis=-1, keepdims=True)
    s = dot - m
    lse = jnp.log(jnp.sum(jnp.exp(s), axis=-1, keepdims=True))
    logp = s - lse
    eye = (jax.lax.broadcasted_iota(jnp.int32, (B, B), 0)
           == jax.lax.broadcasted_iota(jnp.int32, (B, B), 1)).astype(jnp.float32)
    per_ex = -jnp.sum(logp * eye, axis=-1, keepdims=True)               # (B, 1)
    loss = jnp.sum(per_ex, axis=0, keepdims=True) * (1.0 / B)           # (1, 1)

    # single lane-padded output: dot in [0:B, 0:B], loss in column B.
    out_ref[...] = jnp.zeros_like(out_ref)
    out_ref[0:B, 0:B + 1] = jnp.concatenate(
        [dot, jnp.broadcast_to(loss, (B, 1))], axis=1)


def init_encoder_params(key):
    ks = jax.random.split(key, 10)

    def nrm(k, shape, scale=0.02):
        return (scale * jax.random.normal(k, shape)).astype(jnp.float32)

    wq, wk, wv = nrm(ks[0], (H, H)), nrm(ks[1], (H, H)), nrm(ks[2], (H, H))
    wo = nrm(ks[3], (H, H))
    wpool = nrm(ks[4], (H, H))
    wff1 = nrm(ks[5], (H, FF))
    wff2 = nrm(ks[6], (FF, H))

    # lane-aligned packed big weights (bf16)
    w1 = jnp.zeros((H, W1_WIDTH), jnp.float32)
    w1 = w1.at[:, WOFF_QKV:WOFF_QKV + 3 * H].set(
        jnp.concatenate([wq, wk, wv], axis=1))
    w1 = w1.at[:, WOFF_FF1:WOFF_FF1 + FF].set(wff1)
    w1 = w1.at[:, WOFF_O:WOFF_O + H].set(wo)
    w1 = w1.at[:, WOFF_POOL:WOFF_POOL + H].set(wpool)
    w1 = w1.astype(jnp.bfloat16)

    # small vectors: one per sublane row, lane 0 aligned
    def vrow(v):
        v = jnp.asarray(v, jnp.float32).reshape(-1)
        return jnp.pad(v, (0, 128 - v.shape[0]))[None, :]

    small = jnp.concatenate([
        vrow(jnp.ones(H)), vrow(jnp.zeros(H)),        # g_emb, b_emb
        vrow(jnp.zeros(3 * H)),                        # bqkv
        vrow(jnp.zeros(H)),                            # bo
        vrow(jnp.ones(H)), vrow(jnp.zeros(H)),         # g1, b1
        vrow(jnp.zeros(FF)), vrow(jnp.zeros(H)),       # bff1, bff2
        vrow(jnp.ones(H)), vrow(jnp.zeros(H)),         # g2, b2
        vrow(jnp.zeros(H)),                            # bpool
        jnp.zeros((SMALL_ROWS - 11, 128), jnp.float32),
    ], axis=0)
    assert small.shape == (SMALL_ROWS, 128)
    assert w1.shape == (H, W1_WIDTH)

    return dict(
        word_emb=nrm(ks[7], (VOCAB, H)),
        pos_emb=nrm(ks[8], (S, H)),
        type_emb=nrm(ks[9], (1, H)),
        w1=w1,
        wff2=wff2.astype(jnp.bfloat16),
        small=small,
    )


def init_params(key):
    k_ctx, k_resp = jax.random.split(key, 2)
    ctx = init_encoder_params(k_ctx)
    resp = init_encoder_params(k_resp)
    return dict(
        ctx_tab=dict(word_emb=ctx['word_emb'], pos_emb=ctx['pos_emb'],
                     type_emb=ctx['type_emb']),
        resp_tab=dict(word_emb=resp['word_emb'], pos_emb=resp['pos_emb'],
                      type_emb=resp['type_emb']),
        w1=jnp.stack([ctx['w1'], resp['w1']], axis=0),         # (2, H, 512) bf16
        wff2=jnp.stack([ctx['wff2'], resp['wff2']], axis=0),   # (2, FF, H) bf16
        small=jnp.stack([ctx['small'], resp['small']], axis=0) # (2, 16, 128) f32
    )


@jax.jit
def biencoder_forward(params, ctx_ids, ctx_mask, resp_ids, resp_mask):
    def embed(tab, ids):
        # embedding lookup = glue outside the kernel
        # TODO(synk): HF BERT/RoBERTa position-id offset / pad-skip semantics
        #             not reproduced; plain arange positions used.
        pos = jnp.arange(S)
        e = (tab['word_emb'][ids]
             + tab['pos_emb'][pos][None, :, :]
             + tab['type_emb'][0][None, None, :])
        return e.reshape(BS, H).astype(jnp.float32)

    def attn_bias(mask):
        # combined block-diagonal + key-padding additive bias, (B, BS), finite
        row = jnp.arange(B, dtype=jnp.int32)[:, None]
        col = jnp.arange(BS, dtype=jnp.int32)[None, :]
        same_seq = (col // S) == row
        keep = jnp.logical_and(same_seq, mask.reshape(1, BS) > 0)
        return jnp.where(keep, 0.0, NEG_INF).astype(jnp.float32)

    def pack(tab, ids, mask):
        emb = embed(tab, ids)                                  # (BS, H)
        cls = emb[::S, :]                                      # (B, H)  CLS rows
        bias = jnp.pad(attn_bias(mask), ((0, 0), (0, H - BS)))  # (B, H)
        return jnp.concatenate([emb, cls, bias], axis=0)       # (BS+2B, H)

    data = jnp.stack([pack(params['ctx_tab'], ctx_ids, ctx_mask),
                      pack(params['resp_tab'], resp_ids, resp_mask)],
                     axis=0)                                   # (2, BS+2B, H) f32

    vmem = pl.BlockSpec(memory_space=pltpu.MemorySpace.VMEM)
    out = pl.pallas_call(
        biencoder_kernel,
        out_shape=jax.ShapeDtypeStruct((8, 128), jnp.float32),
        in_specs=[vmem, vmem, vmem, vmem],
        out_specs=vmem,
    )(data, params['w1'], params['wff2'], params['small'])

    loss = out[0, B]
    dot = out[0:B, 0:B]
    return loss, dot


if __name__ == "__main__":
    key = jax.random.PRNGKey(0)
    pkey, cik, rik, cmk, rmk = jax.random.split(key, 5)

    params = init_params(pkey)
    context_input_ids = jax.random.randint(cik, (B, S), 0, VOCAB, dtype=jnp.int32)
    responses_input_ids = jax.random.randint(rik, (B, S), 0, VOCAB, dtype=jnp.int32)

    # mostly-ones masks with a partially padded tail to exercise the mask path
    context_input_masks = jnp.ones((B, S), dtype=jnp.int32)
    context_input_masks = context_input_masks.at[:, S - 2:].set(
        jax.random.randint(cmk, (B, 2), 0, 2, dtype=jnp.int32))
    responses_input_masks = jnp.ones((B, S), dtype=jnp.int32)
    responses_input_masks = responses_input_masks.at[:, S - 2:].set(
        jax.random.randint(rmk, (B, 2), 0, 2, dtype=jnp.int32))

    loss, dot = biencoder_forward(params, context_input_ids, context_input_masks,
                                  responses_input_ids, responses_input_masks)
    jax.block_until_ready((loss, dot))
    print("KERNEL_OK")
</pallas_src>

<mosaic_0001>
module attributes {stable_mosaic.version = 11 : i64} {
  func.func @biencoder_kernel(%arg0: memref<2x20x32xf32, #tpu.memory_space<vmem>>, %arg1: memref<2x32x512xbf16, #tpu.memory_space<vmem>>, %arg2: memref<2x128x32xbf16, #tpu.memory_space<vmem>>, %arg3: memref<2x16x128xf32, #tpu.memory_space<vmem>>, %arg4: memref<8x128xf32, #tpu.memory_space<vmem>>) attributes {dimension_semantics = [], scalar_prefetch = 0 : i64, scratch_operands = 0 : i64, tpu.core_type = #tpu.core_type<tc>} {
    %c0 = arith.constant 0 : index
    %c0_0 = arith.constant 0 : index
    %c0_1 = arith.constant 0 : index
    %0 = vector.load %arg3[%c0, %c0_0, %c0_1] : memref<2x16x128xf32, #tpu.memory_space<vmem>>, vector<1x1x32xf32>
    %1 = vector.shape_cast %0 : vector<1x1x32xf32> to vector<1x32xf32>
    %c0_2 = arith.constant 0 : index
    %c1 = arith.constant 1 : index
    %c0_3 = arith.constant 0 : index
    %2 = vector.load %arg3[%c0_2, %c1, %c0_3] : memref<2x16x128xf32, #tpu.memory_space<vmem>>, vector<1x1x32xf32>
    %3 = vector.shape_cast %2 : vector<1x1x32xf32> to vector<1x32xf32>
    %c0_4 = arith.constant 0 : index
    %c2 = arith.constant 2 : index
    %c0_5 = arith.constant 0 : index
    %4 = vector.load %arg3[%c0_4, %c2, %c0_5] : memref<2x16x128xf32, #tpu.memory_space<vmem>>, vector<1x1x96xf32>
    %5 = vector.shape_cast %4 : vector<1x1x96xf32> to vector<1x96xf32>
    %c0_6 = arith.constant 0 : index
    %c3 = arith.constant 3 : index
    %c0_7 = arith.constant 0 : index
    %6 = vector.load %arg3[%c0_6, %c3, %c0_7] : memref<2x16x128xf32, #tpu.memory_space<vmem>>, vector<1x1x32xf32>
    %7 = vector.shape_cast %6 : vector<1x1x32xf32> to vector<1x32xf32>
    %c0_8 = arith.constant 0 : index
    %c4 = arith.constant 4 : index
    %c0_9 = arith.constant 0 : index
    %8 = vector.load %arg3[%c0_8, %c4, %c0_9] : memref<2x16x128xf32, #tpu.memory_space<vmem>>, vector<1x1x32xf32>
    %9 = vector.shape_cast %8 : vector<1x1x32xf32> to vector<1x32xf32>
    %c0_10 = arith.constant 0 : index
    %c5 = arith.constant 5 : index
    %c0_11 = arith.constant 0 : index
    %10 = vector.load %arg3[%c0_10, %c5, %c0_11] : memref<2x16x128xf32, #tpu.memory_space<vmem>>, vector<1x1x32xf32>
    %11 = vector.shape_cast %10 : vector<1x1x32xf32> to vector<1x32xf32>
    %c0_12 = arith.constant 0 : index
    %c6 = arith.constant 6 : index
    %c0_13 = arith.constant 0 : index
    %12 = vector.load %arg3[%c0_12, %c6, %c0_13] : memref<2x16x128xf32, #tpu.memory_space<vmem>>, vector<1x1x128xf32>
    %13 = vector.shape_cast %12 : vector<1x1x128xf32> to vector<1x128xf32>
    %c0_14 = arith.constant 0 : index
    %c7 = arith.constant 7 : index
    %c0_15 = arith.constant 0 : index
    %14 = vector.load %arg3[%c0_14, %c7, %c0_15] : memref<2x16x128xf32, #tpu.memory_space<vmem>>, vector<1x1x32xf32>
    %15 = vector.shape_cast %14 : vector<1x1x32xf32> to vector<1x32xf32>
    %c0_16 = arith.constant 0 : index
    %c8 = arith.constant 8 : index
    %c0_17 = arith.constant 0 : index
    %16 = vector.load %arg3[%c0_16, %c8, %c0_17] : memref<2x16x128xf32, #tpu.memory_space<vmem>>, vector<1x1x32xf32>
    %17 = vector.shape_cast %16 : vector<1x1x32xf32> to vector<1x32xf32>
    %c0_18 = arith.constant 0 : index
    %c9 = arith.constant 9 : index
    %c0_19 = arith.constant 0 : index
    %18 = vector.load %arg3[%c0_18, %c9, %c0_19] : memref<2x16x128xf32, #tpu.memory_space<vmem>>, vector<1x1x32xf32>
    %19 = vector.shape_cast %18 : vector<1x1x32xf32> to vector<1x32xf32>
    %c0_20 = arith.constant 0 : index
    %c10 = arith.constant 10 : index
    %c0_21 = arith.constant 0 : index
    %20 = vector.load %arg3[%c0_20, %c10, %c0_21] : memref<2x16x128xf32, #tpu.memory_space<vmem>>, vector<1x1x32xf32>
    %21 = vector.shape_cast %20 : vector<1x1x32xf32> to vector<1x32xf32>
    %c0_22 = arith.constant 0 : index
    %c0_23 = arith.constant 0 : index
    %c0_24 = arith.constant 0 : index
    %22 = vector.load %arg0[%c0_22, %c0_23, %c0_24] : memref<2x20x32xf32, #tpu.memory_space<vmem>>, vector<1x18x32xf32>
    %23 = vector.shape_cast %22 : vector<1x18x32xf32> to vector<18x32xf32>
    %c0_25 = arith.constant 0 : index
    %c18 = arith.constant 18 : index
    %c0_26 = arith.constant 0 : index
    %24 = vector.load %arg0[%c0_25, %c18, %c0_26] : memref<2x20x32xf32, #tpu.memory_space<vmem>>, vector<1x2x16xf32>
    %25 = vector.shape_cast %24 : vector<1x2x16xf32> to vector<2x16xf32>
    %cst = arith.constant dense<0.000000e+00> : vector<18xf32>
    %26 = vector.multi_reduction <add>, %23, %cst [1] : vector<18x32xf32> to vector<18xf32>
    %27 = vector.shape_cast %26 : vector<18xf32> to vector<18x1xf32>
    %cst_27 = arith.constant 3.200000e+01 : f32
    %28 = vector.broadcast %cst_27 : f32 to vector<18x1xf32>
    %29 = arith.divf %27, %28 : vector<18x1xf32>
    %30 = vector.broadcast %29 : vector<18x1xf32> to vector<18x32xf32>
    %31 = arith.subf %23, %30 : vector<18x32xf32>
    %32 = vector.broadcast %29 : vector<18x1xf32> to vector<18x32xf32>
    %33 = arith.subf %23, %32 : vector<18x32xf32>
    %34 = arith.mulf %31, %33 : vector<18x32xf32>
    %cst_28 = arith.constant dense<0.000000e+00> : vector<18xf32>
    %35 = vector.multi_reduction <add>, %34, %cst_28 [1] : vector<18x32xf32> to vector<18xf32>
    %36 = vector.shape_cast %35 : vector<18xf32> to vector<18x1xf32>
    %cst_29 = arith.constant 3.200000e+01 : f32
    %37 = vector.broadcast %cst_29 : f32 to vector<18x1xf32>
    %38 = arith.divf %36, %37 : vector<18x1xf32>
    %39 = vector.broadcast %29 : vector<18x1xf32> to vector<18x32xf32>
    %40 = arith.subf %23, %39 : vector<18x32xf32>
    %cst_30 = arith.constant 9.99999974E-6 : f32
    %41 = vector.broadcast %cst_30 : f32 to vector<18x1xf32>
    %42 = arith.addf %38, %41 : vector<18x1xf32>
    %43 = math.rsqrt %42 : vector<18x1xf32>
    %44 = vector.broadcast %43 : vector<18x1xf32> to vector<18x32xf32>
    %45 = arith.mulf %40, %44 : vector<18x32xf32>
    %46 = vector.broadcast %1 : vector<1x32xf32> to vector<18x32xf32>
    %47 = arith.mulf %45, %46 : vector<18x32xf32>
    %48 = vector.broadcast %3 : vector<1x32xf32> to vector<18x32xf32>
    %49 = arith.addf %47, %48 : vector<18x32xf32>
    %50 = vector.extract_strided_slice %49 {offsets = [16, 0], sizes = [2, 32], strides = [1, 1]} : vector<18x32xf32> to vector<2x32xf32>
    %51 = arith.truncf %49 : vector<18x32xf32> to vector<18x32xbf16>
    %c0_31 = arith.constant 0 : index
    %c0_32 = arith.constant 0 : index
    %c0_33 = arith.constant 0 : index
    %52 = vector.load %arg1[%c0_31, %c0_32, %c0_33] : memref<2x32x512xbf16, #tpu.memory_space<vmem>>, vector<1x32x96xbf16>
    %53 = vector.shape_cast %52 : vector<1x32x96xbf16> to vector<32x96xbf16>
    %cst_34 = arith.constant dense<0.000000e+00> : vector<18x96xf32>
    %54 = tpu.matmul %51, %53, %cst_34 {dimension_numbers = #tpu.dot_dimension_numbers<[1], [0], [0], [1], [0, 0, 1, 1], [], []>} : vector<18x32xbf16>, vector<32x96xbf16>, vector<18x96xf32> -> vector<18x96xf32>
    %55 = vector.broadcast %5 : vector<1x96xf32> to vector<18x96xf32>
    %56 = arith.addf %54, %55 : vector<18x96xf32>
    %57 = vector.extract_strided_slice %56 {offsets = [0, 32], sizes = [16, 32], strides = [1, 1]} : vector<18x96xf32> to vector<16x32xf32>
    %58 = vector.extract_strided_slice %56 {offsets = [0, 64], sizes = [16, 32], strides = [1, 1]} : vector<18x96xf32> to vector<16x32xf32>
    %59 = vector.extract_strided_slice %56 {offsets = [16, 0], sizes = [2, 32], strides = [1, 1]} : vector<18x96xf32> to vector<2x32xf32>
    %cst_35 = arith.constant dense<0.000000e+00> : vector<2x16xf32>
    %60 = tpu.matmul %59, %57, %cst_35 {dimension_numbers = #tpu.dot_dimension_numbers<[1], [1], [0], [0], [0, 0, 1, 0], [], []>} : vector<2x32xf32>, vector<16x32xf32>, vector<2x16xf32> -> vector<2x16xf32>
    %cst_36 = arith.constant 0.176776692 : f32
    %61 = vector.broadcast %cst_36 : f32 to vector<2x16xf32>
    %62 = arith.mulf %60, %61 : vector<2x16xf32>
    %63 = arith.addf %62, %25 : vector<2x16xf32>
    %cst_37 = arith.constant dense<0xFF800000> : vector<2xf32>
    %64 = vector.multi_reduction <maximumf>, %63, %cst_37 [1] : vector<2x16xf32> to vector<2xf32>
    %65 = vector.shape_cast %64 : vector<2xf32> to vector<2x1xf32>
    %66 = vector.broadcast %65 : vector<2x1xf32> to vector<2x16xf32>
    %67 = arith.subf %63, %66 : vector<2x16xf32>
    %68 = math.exp %67 : vector<2x16xf32>
    %cst_38 = arith.constant dense<0.000000e+00> : vector<2xf32>
    %69 = vector.multi_reduction <add>, %68, %cst_38 [1] : vector<2x16xf32> to vector<2xf32>
    %70 = vector.shape_cast %69 : vector<2xf32> to vector<2x1xf32>
    %71 = tpu.reciprocal %70 {approx = true} : vector<2x1xf32> -> vector<2x1xf32>
    %72 = vector.broadcast %71 : vector<2x1xf32> to vector<2x16xf32>
    %73 = arith.mulf %68, %72 : vector<2x16xf32>
    %74 = arith.truncf %73 : vector<2x16xf32> to vector<2x16xbf16>
    %75 = arith.truncf %58 : vector<16x32xf32> to vector<16x32xbf16>
    %cst_39 = arith.constant dense<0.000000e+00> : vector<2x32xf32>
    %76 = tpu.matmul %74, %75, %cst_39 {dimension_numbers = #tpu.dot_dimension_numbers<[1], [0], [0], [1], [0, 0, 1, 1], [], []>} : vector<2x16xbf16>, vector<16x32xbf16>, vector<2x32xf32> -> vector<2x32xf32>
    %77 = arith.truncf %76 : vector<2x32xf32> to vector<2x32xbf16>
    %c0_40 = arith.constant 0 : index
    %c0_41 = arith.constant 0 : index
    %c256 = arith.constant 256 : index
    %78 = vector.load %arg1[%c0_40, %c0_41, %c256] : memref<2x32x512xbf16, #tpu.memory_space<vmem>>, vector<1x32x32xbf16>
    %79 = vector.shape_cast %78 : vector<1x32x32xbf16> to vector<32x32xbf16>
    %cst_42 = arith.constant dense<0.000000e+00> : vector<2x32xf32>
    %80 = tpu.matmul %77, %79, %cst_42 {dimension_numbers = #tpu.dot_dimension_numbers<[1], [0], [0], [1], [0, 0, 1, 1], [], []>} : vector<2x32xbf16>, vector<32x32xbf16>, vector<2x32xf32> -> vector<2x32xf32>
    %81 = vector.broadcast %7 : vector<1x32xf32> to vector<2x32xf32>
    %82 = arith.addf %80, %81 : vector<2x32xf32>
    %83 = arith.addf %50, %82 : vector<2x32xf32>
    %cst_43 = arith.constant dense<0.000000e+00> : vector<2xf32>
    %84 = vector.multi_reduction <add>, %83, %cst_43 [1] : vector<2x32xf32> to vector<2xf32>
    %85 = vector.shape_cast %84 : vector<2xf32> to vector<2x1xf32>
    %cst_44 = arith.constant 3.200000e+01 : f32
    %86 = vector.broadcast %cst_44 : f32 to vector<2x1xf32>
    %87 = arith.divf %85, %86 : vector<2x1xf32>
    %88 = vector.broadcast %87 : vector<2x1xf32> to vector<2x32xf32>
    %89 = arith.subf %83, %88 : vector<2x32xf32>
    %90 = vector.broadcast %87 : vector<2x1xf32> to vector<2x32xf32>
    %91 = arith.subf %83, %90 : vector<2x32xf32>
    %92 = arith.mulf %89, %91 : vector<2x32xf32>
    %cst_45 = arith.constant dense<0.000000e+00> : vector<2xf32>
    %93 = vector.multi_reduction <add>, %92, %cst_45 [1] : vector<2x32xf32> to vector<2xf32>
    %94 = vector.shape_cast %93 : vector<2xf32> to vector<2x1xf32>
    %cst_46 = arith.constant 3.200000e+01 : f32
    %95 = vector.broadcast %cst_46 : f32 to vector<2x1xf32>
    %96 = arith.divf %94, %95 : vector<2x1xf32>
    %97 = vector.broadcast %87 : vector<2x1xf32> to vector<2x32xf32>
    %98 = arith.subf %83, %97 : vector<2x32xf32>
    %cst_47 = arith.constant 9.99999974E-6 : f32
    %99 = vector.broadcast %cst_47 : f32 to vector<2x1xf32>
    %100 = arith.addf %96, %99 : vector<2x1xf32>
    %101 = math.rsqrt %100 : vector<2x1xf32>
    %102 = vector.broadcast %101 : vector<2x1xf32> to vector<2x32xf32>
    %103 = arith.mulf %98, %102 : vector<2x32xf32>
    %104 = vector.broadcast %9 : vector<1x32xf32> to vector<2x32xf32>
    %105 = arith.mulf %103, %104 : vector<2x32xf32>
    %106 = vector.broadcast %11 : vector<1x32xf32> to vector<2x32xf32>
    %107 = arith.addf %105, %106 : vector<2x32xf32>
    %108 = arith.truncf %107 : vector<2x32xf32> to vector<2x32xbf16>
    %c0_48 = arith.constant 0 : index
    %c0_49 = arith.constant 0 : index
    %c128 = arith.constant 128 : index
    %109 = vector.load %arg1[%c0_48, %c0_49, %c128] : memref<2x32x512xbf16, #tpu.memory_space<vmem>>, vector<1x32x128xbf16>
    %110 = vector.shape_cast %109 : vector<1x32x128xbf16> to vector<32x128xbf16>
    %cst_50 = arith.constant dense<0.000000e+00> : vector<2x128xf32>
    %111 = tpu.matmul %108, %110, %cst_50 {dimension_numbers = #tpu.dot_dimension_numbers<[1], [0], [0], [1], [0, 0, 1, 1], [], []>} : vector<2x32xbf16>, vector<32x128xbf16>, vector<2x128xf32> -> vector<2x128xf32>
    %112 = vector.broadcast %13 : vector<1x128xf32> to vector<2x128xf32>
    %113 = arith.addf %111, %112 : vector<2x128xf32>
    %cst_51 = arith.constant 5.000000e-01 : f32
    %114 = vector.broadcast %cst_51 : f32 to vector<2x128xf32>
    %115 = arith.mulf %114, %113 : vector<2x128xf32>
    %cst_52 = arith.constant 4.471500e-02 : f32
    %116 = vector.broadcast %cst_52 : f32 to vector<2x128xf32>
    %117 = arith.mulf %116, %113 : vector<2x128xf32>
    %118 = arith.mulf %117, %113 : vector<2x128xf32>
    %119 = arith.mulf %118, %113 : vector<2x128xf32>
    %120 = arith.addf %113, %119 : vector<2x128xf32>
    %cst_53 = arith.constant 0.797884583 : f32
    %121 = vector.broadcast %cst_53 : f32 to vector<2x128xf32>
    %122 = arith.mulf %121, %120 : vector<2x128xf32>
    %123 = math.tanh %122 : vector<2x128xf32>
    %cst_54 = arith.constant 1.000000e+00 : f32
    %124 = vector.broadcast %cst_54 : f32 to vector<2x128xf32>
    %125 = arith.addf %124, %123 : vector<2x128xf32>
    %126 = arith.mulf %115, %125 : vector<2x128xf32>
    %127 = arith.truncf %126 : vector<2x128xf32> to vector<2x128xbf16>
    %c0_55 = arith.constant 0 : index
    %c0_56 = arith.constant 0 : index
    %c0_57 = arith.constant 0 : index
    %128 = vector.load %arg2[%c0_55, %c0_56, %c0_57] : memref<2x128x32xbf16, #tpu.memory_space<vmem>>, vector<1x128x32xbf16>
    %129 = vector.shape_cast %128 : vector<1x128x32xbf16> to vector<128x32xbf16>
    %cst_58 = arith.constant dense<0.000000e+00> : vector<2x32xf32>
    %130 = tpu.matmul %127, %129, %cst_58 {dimension_numbers = #tpu.dot_dimension_numbers<[1], [0], [0], [1], [0, 0, 1, 1], [], []>} : vector<2x128xbf16>, vector<128x32xbf16>, vector<2x32xf32> -> vector<2x32xf32>
    %131 = vector.broadcast %15 : vector<1x32xf32> to vector<2x32xf32>
    %132 = arith.addf %130, %131 : vector<2x32xf32>
    %133 = arith.addf %107, %132 : vector<2x32xf32>
    %cst_59 = arith.constant dense<0.000000e+00> : vector<2xf32>
    %134 = vector.multi_reduction <add>, %133, %cst_59 [1] : vector<2x32xf32> to vector<2xf32>
    %135 = vector.shape_cast %134 : vector<2xf32> to vector<2x1xf32>
    %cst_60 = arith.constant 3.200000e+01 : f32
    %136 = vector.broadcast %cst_60 : f32 to vector<2x1xf32>
    %137 = arith.divf %135, %136 : vector<2x1xf32>
    %138 = vector.broadcast %137 : vector<2x1xf32> to vector<2x32xf32>
    %139 = arith.subf %133, %138 : vector<2x32xf32>
    %140 = vector.broadcast %137 : vector<2x1xf32> to vector<2x32xf32>
    %141 = arith.subf %133, %140 : vector<2x32xf32>
    %142 = arith.mulf %139, %141 : vector<2x32xf32>
    %cst_61 = arith.constant dense<0.000000e+00> : vector<2xf32>
    %143 = vector.multi_reduction <add>, %142, %cst_61 [1] : vector<2x32xf32> to vector<2xf32>
    %144 = vector.shape_cast %143 : vector<2xf32> to vector<2x1xf32>
    %cst_62 = arith.constant 3.200000e+01 : f32
    %145 = vector.broadcast %cst_62 : f32 to vector<2x1xf32>
    %146 = arith.divf %144, %145 : vector<2x1xf32>
    %147 = vector.broadcast %137 : vector<2x1xf32> to vector<2x32xf32>
    %148 = arith.subf %133, %147 : vector<2x32xf32>
    %cst_63 = arith.constant 9.99999974E-6 : f32
    %149 = vector.broadcast %cst_63 : f32 to vector<2x1xf32>
    %150 = arith.addf %146, %149 : vector<2x1xf32>
    %151 = math.rsqrt %150 : vector<2x1xf32>
    %152 = vector.broadcast %151 : vector<2x1xf32> to vector<2x32xf32>
    %153 = arith.mulf %148, %152 : vector<2x32xf32>
    %154 = vector.broadcast %17 : vector<1x32xf32> to vector<2x32xf32>
    %155 = arith.mulf %153, %154 : vector<2x32xf32>
    %156 = vector.broadcast %19 : vector<1x32xf32> to vector<2x32xf32>
    %157 = arith.addf %155, %156 : vector<2x32xf32>
    %158 = arith.truncf %157 : vector<2x32xf32> to vector<2x32xbf16>
    %c0_64 = arith.constant 0 : index
    %c0_65 = arith.constant 0 : index
    %c384 = arith.constant 384 : index
    %159 = vector.load %arg1[%c0_64, %c0_65, %c384] : memref<2x32x512xbf16, #tpu.memory_space<vmem>>, vector<1x32x32xbf16>
    %160 = vector.shape_cast %159 : vector<1x32x32xbf16> to vector<32x32xbf16>
    %cst_66 = arith.constant dense<0.000000e+00> : vector<2x32xf32>
    %161 = tpu.matmul %158, %160, %cst_66 {dimension_numbers = #tpu.dot_dimension_numbers<[1], [0], [0], [1], [0, 0, 1, 1], [], []>} : vector<2x32xbf16>, vector<32x32xbf16>, vector<2x32xf32> -> vector<2x32xf32>
    %162 = vector.broadcast %21 : vector<1x32xf32> to vector<2x32xf32>
    %163 = arith.addf %161, %162 : vector<2x32xf32>
    %164 = math.tanh %163 : vector<2x32xf32>
    %c1_67 = arith.constant 1 : index
    %c0_68 = arith.constant 0 : index
    %c0_69 = arith.constant 0 : index
    %165 = vector.load %arg3[%c1_67, %c0_68, %c0_69] : memref<2x16x128xf32, #tpu.memory_space<vmem>>, vector<1x1x32xf32>
    %166 = vector.shape_cast %165 : vector<1x1x32xf32> to vector<1x32xf32>
    %c1_70 = arith.constant 1 : index
    %c1_71 = arith.constant 1 : index
    %c0_72 = arith.constant 0 : index
    %167 = vector.load %arg3[%c1_70, %c1_71, %c0_72] : memref<2x16x128xf32, #tpu.memory_space<vmem>>, vector<1x1x32xf32>
    %168 = vector.shape_cast %167 : vector<1x1x32xf32> to vector<1x32xf32>
    %c1_73 = arith.constant 1 : index
    %c2_74 = arith.constant 2 : index
    %c0_75 = arith.constant 0 : index
    %169 = vector.load %arg3[%c1_73, %c2_74, %c0_75] : memref<2x16x128xf32, #tpu.memory_space<vmem>>, vector<1x1x96xf32>
    %170 = vector.shape_cast %169 : vector<1x1x96xf32> to vector<1x96xf32>
    %c1_76 = arith.constant 1 : index
    %c3_77 = arith.constant 3 : index
    %c0_78 = arith.constant 0 : index
    %171 = vector.load %arg3[%c1_76, %c3_77, %c0_78] : memref<2x16x128xf32, #tpu.memory_space<vmem>>, vector<1x1x32xf32>
    %172 = vector.shape_cast %171 : vector<1x1x32xf32> to vector<1x32xf32>
    %c1_79 = arith.constant 1 : index
    %c4_80 = arith.constant 4 : index
    %c0_81 = arith.constant 0 : index
    %173 = vector.load %arg3[%c1_79, %c4_80, %c0_81] : memref<2x16x128xf32, #tpu.memory_space<vmem>>, vector<1x1x32xf32>
    %174 = vector.shape_cast %173 : vector<1x1x32xf32> to vector<1x32xf32>
    %c1_82 = arith.constant 1 : index
    %c5_83 = arith.constant 5 : index
    %c0_84 = arith.constant 0 : index
    %175 = vector.load %arg3[%c1_82, %c5_83, %c0_84] : memref<2x16x128xf32, #tpu.memory_space<vmem>>, vector<1x1x32xf32>
    %176 = vector.shape_cast %175 : vector<1x1x32xf32> to vector<1x32xf32>
    %c1_85 = arith.constant 1 : index
    %c6_86 = arith.constant 6 : index
    %c0_87 = arith.constant 0 : index
    %177 = vector.load %arg3[%c1_85, %c6_86, %c0_87] : memref<2x16x128xf32, #tpu.memory_space<vmem>>, vector<1x1x128xf32>
    %178 = vector.shape_cast %177 : vector<1x1x128xf32> to vector<1x128xf32>
    %c1_88 = arith.constant 1 : index
    %c7_89 = arith.constant 7 : index
    %c0_90 = arith.constant 0 : index
    %179 = vector.load %arg3[%c1_88, %c7_89, %c0_90] : memref<2x16x128xf32, #tpu.memory_space<vmem>>, vector<1x1x32xf32>
    %180 = vector.shape_cast %179 : vector<1x1x32xf32> to vector<1x32xf32>
    %c1_91 = arith.constant 1 : index
    %c8_92 = arith.constant 8 : index
    %c0_93 = arith.constant 0 : index
    %181 = vector.load %arg3[%c1_91, %c8_92, %c0_93] : memref<2x16x128xf32, #tpu.memory_space<vmem>>, vector<1x1x32xf32>
    %182 = vector.shape_cast %181 : vector<1x1x32xf32> to vector<1x32xf32>
    %c1_94 = arith.constant 1 : index
    %c9_95 = arith.constant 9 : index
    %c0_96 = arith.constant 0 : index
    %183 = vector.load %arg3[%c1_94, %c9_95, %c0_96] : memref<2x16x128xf32, #tpu.memory_space<vmem>>, vector<1x1x32xf32>
    %184 = vector.shape_cast %183 : vector<1x1x32xf32> to vector<1x32xf32>
    %c1_97 = arith.constant 1 : index
    %c10_98 = arith.constant 10 : index
    %c0_99 = arith.constant 0 : index
    %185 = vector.load %arg3[%c1_97, %c10_98, %c0_99] : memref<2x16x128xf32, #tpu.memory_space<vmem>>, vector<1x1x32xf32>
    %186 = vector.shape_cast %185 : vector<1x1x32xf32> to vector<1x32xf32>
    %c1_100 = arith.constant 1 : index
    %c0_101 = arith.constant 0 : index
    %c0_102 = arith.constant 0 : index
    %187 = vector.load %arg0[%c1_100, %c0_101, %c0_102] : memref<2x20x32xf32, #tpu.memory_space<vmem>>, vector<1x18x32xf32>
    %188 = vector.shape_cast %187 : vector<1x18x32xf32> to vector<18x32xf32>
    %c1_103 = arith.constant 1 : index
    %c18_104 = arith.constant 18 : index
    %c0_105 = arith.constant 0 : index
    %189 = vector.load %arg0[%c1_103, %c18_104, %c0_105] : memref<2x20x32xf32, #tpu.memory_space<vmem>>, vector<1x2x16xf32>
    %190 = vector.shape_cast %189 : vector<1x2x16xf32> to vector<2x16xf32>
    %cst_106 = arith.constant dense<0.000000e+00> : vector<18xf32>
    %191 = vector.multi_reduction <add>, %188, %cst_106 [1] : vector<18x32xf32> to vector<18xf32>
    %192 = vector.shape_cast %191 : vector<18xf32> to vector<18x1xf32>
    %cst_107 = arith.constant 3.200000e+01 : f32
    %193 = vector.broadcast %cst_107 : f32 to vector<18x1xf32>
    %194 = arith.divf %192, %193 : vector<18x1xf32>
    %195 = vector.broadcast %194 : vector<18x1xf32> to vector<18x32xf32>
    %196 = arith.subf %188, %195 : vector<18x32xf32>
    %197 = vector.broadcast %194 : vector<18x1xf32> to vector<18x32xf32>
    %198 = arith.subf %188, %197 : vector<18x32xf32>
    %199 = arith.mulf %196, %198 : vector<18x32xf32>
    %cst_108 = arith.constant dense<0.000000e+00> : vector<18xf32>
    %200 = vector.multi_reduction <add>, %199, %cst_108 [1] : vector<18x32xf32> to vector<18xf32>
    %201 = vector.shape_cast %200 : vector<18xf32> to vector<18x1xf32>
    %cst_109 = arith.constant 3.200000e+01 : f32
    %202 = vector.broadcast %cst_109 : f32 to vector<18x1xf32>
    %203 = arith.divf %201, %202 : vector<18x1xf32>
    %204 = vector.broadcast %194 : vector<18x1xf32> to vector<18x32xf32>
    %205 = arith.subf %188, %204 : vector<18x32xf32>
    %cst_110 = arith.constant 9.99999974E-6 : f32
    %206 = vector.broadcast %cst_110 : f32 to vector<18x1xf32>
    %207 = arith.addf %203, %206 : vector<18x1xf32>
    %208 = math.rsqrt %207 : vector<18x1xf32>
    %209 = vector.broadcast %208 : vector<18x1xf32> to vector<18x32xf32>
    %210 = arith.mulf %205, %209 : vector<18x32xf32>
    %211 = vector.broadcast %166 : vector<1x32xf32> to vector<18x32xf32>
    %212 = arith.mulf %210, %211 : vector<18x32xf32>
    %213 = vector.broadcast %168 : vector<1x32xf32> to vector<18x32xf32>
    %214 = arith.addf %212, %213 : vector<18x32xf32>
    %215 = vector.extract_strided_slice %214 {offsets = [16, 0], sizes = [2, 32], strides = [1, 1]} : vector<18x32xf32> to vector<2x32xf32>
    %216 = arith.truncf %214 : vector<18x32xf32> to vector<18x32xbf16>
    %c1_111 = arith.constant 1 : index
    %c0_112 = arith.constant 0 : index
    %c0_113 = arith.constant 0 : index
    %217 = vector.load %arg1[%c1_111, %c0_112, %c0_113] : memref<2x32x512xbf16, #tpu.memory_space<vmem>>, vector<1x32x96xbf16>
    %218 = vector.shape_cast %217 : vector<1x32x96xbf16> to vector<32x96xbf16>
    %cst_114 = arith.constant dense<0.000000e+00> : vector<18x96xf32>
    %219 = tpu.matmul %216, %218, %cst_114 {dimension_numbers = #tpu.dot_dimension_numbers<[1], [0], [0], [1], [0, 0, 1, 1], [], []>} : vector<18x32xbf16>, vector<32x96xbf16>, vector<18x96xf32> -> vector<18x96xf32>
    %220 = vector.broadcast %170 : vector<1x96xf32> to vector<18x96xf32>
    %221 = arith.addf %219, %220 : vector<18x96xf32>
    %222 = vector.extract_strided_slice %221 {offsets = [0, 32], sizes = [16, 32], strides = [1, 1]} : vector<18x96xf32> to vector<16x32xf32>
    %223 = vector.extract_strided_slice %221 {offsets = [0, 64], sizes = [16, 32], strides = [1, 1]} : vector<18x96xf32> to vector<16x32xf32>
    %224 = vector.extract_strided_slice %221 {offsets = [16, 0], sizes = [2, 32], strides = [1, 1]} : vector<18x96xf32> to vector<2x32xf32>
    %cst_115 = arith.constant dense<0.000000e+00> : vector<2x16xf32>
    %225 = tpu.matmul %224, %222, %cst_115 {dimension_numbers = #tpu.dot_dimension_numbers<[1], [1], [0], [0], [0, 0, 1, 0], [], []>} : vector<2x32xf32>, vector<16x32xf32>, vector<2x16xf32> -> vector<2x16xf32>
    %cst_116 = arith.constant 0.176776692 : f32
    %226 = vector.broadcast %cst_116 : f32 to vector<2x16xf32>
    %227 = arith.mulf %225, %226 : vector<2x16xf32>
    %228 = arith.addf %227, %190 : vector<2x16xf32>
    %cst_117 = arith.constant dense<0xFF800000> : vector<2xf32>
    %229 = vector.multi_reduction <maximumf>, %228, %cst_117 [1] : vector<2x16xf32> to vector<2xf32>
    %230 = vector.shape_cast %229 : vector<2xf32> to vector<2x1xf32>
    %231 = vector.broadcast %230 : vector<2x1xf32> to vector<2x16xf32>
    %232 = arith.subf %228, %231 : vector<2x16xf32>
    %233 = math.exp %232 : vector<2x16xf32>
    %cst_118 = arith.constant dense<0.000000e+00> : vector<2xf32>
    %234 = vector.multi_reduction <add>, %233, %cst_118 [1] : vector<2x16xf32> to vector<2xf32>
    %235 = vector.shape_cast %234 : vector<2xf32> to vector<2x1xf32>
    %236 = tpu.reciprocal %235 {approx = true} : vector<2x1xf32> -> vector<2x1xf32>
    %237 = vector.broadcast %236 : vector<2x1xf32> to vector<2x16xf32>
    %238 = arith.mulf %233, %237 : vector<2x16xf32>
    %239 = arith.truncf %238 : vector<2x16xf32> to vector<2x16xbf16>
    %240 = arith.truncf %223 : vector<16x32xf32> to vector<16x32xbf16>
    %cst_119 = arith.constant dense<0.000000e+00> : vector<2x32xf32>
    %241 = tpu.matmul %239, %240, %cst_119 {dimension_numbers = #tpu.dot_dimension_numbers<[1], [0], [0], [1], [0, 0, 1, 1], [], []>} : vector<2x16xbf16>, vector<16x32xbf16>, vector<2x32xf32> -> vector<2x32xf32>
    %242 = arith.truncf %241 : vector<2x32xf32> to vector<2x32xbf16>
    %c1_120 = arith.constant 1 : index
    %c0_121 = arith.constant 0 : index
    %c256_122 = arith.constant 256 : index
    %243 = vector.load %arg1[%c1_120, %c0_121, %c256_122] : memref<2x32x512xbf16, #tpu.memory_space<vmem>>, vector<1x32x32xbf16>
    %244 = vector.shape_cast %243 : vector<1x32x32xbf16> to vector<32x32xbf16>
    %cst_123 = arith.constant dense<0.000000e+00> : vector<2x32xf32>
    %245 = tpu.matmul %242, %244, %cst_123 {dimension_numbers = #tpu.dot_dimension_numbers<[1], [0], [0], [1], [0, 0, 1, 1], [], []>} : vector<2x32xbf16>, vector<32x32xbf16>, vector<2x32xf32> -> vector<2x32xf32>
    %246 = vector.broadcast %172 : vector<1x32xf32> to vector<2x32xf32>
    %247 = arith.addf %245, %246 : vector<2x32xf32>
    %248 = arith.addf %215, %247 : vector<2x32xf32>
    %cst_124 = arith.constant dense<0.000000e+00> : vector<2xf32>
    %249 = vector.multi_reduction <add>, %248, %cst_124 [1] : vector<2x32xf32> to vector<2xf32>
    %250 = vector.shape_cast %249 : vector<2xf32> to vector<2x1xf32>
    %cst_125 = arith.constant 3.200000e+01 : f32
    %251 = vector.broadcast %cst_125 : f32 to vector<2x1xf32>
    %252 = arith.divf %250, %251 : vector<2x1xf32>
    %253 = vector.broadcast %252 : vector<2x1xf32> to vector<2x32xf32>
    %254 = arith.subf %248, %253 : vector<2x32xf32>
    %255 = vector.broadcast %252 : vector<2x1xf32> to vector<2x32xf32>
    %256 = arith.subf %248, %255 : vector<2x32xf32>
    %257 = arith.mulf %254, %256 : vector<2x32xf32>
    %cst_126 = arith.constant dense<0.000000e+00> : vector<2xf32>
    %258 = vector.multi_reduction <add>, %257, %cst_126 [1] : vector<2x32xf32> to vector<2xf32>
    %259 = vector.shape_cast %258 : vector<2xf32> to vector<2x1xf32>
    %cst_127 = arith.constant 3.200000e+01 : f32
    %260 = vector.broadcast %cst_127 : f32 to vector<2x1xf32>
    %261 = arith.divf %259, %260 : vector<2x1xf32>
    %262 = vector.broadcast %252 : vector<2x1xf32> to vector<2x32xf32>
    %263 = arith.subf %248, %262 : vector<2x32xf32>
    %cst_128 = arith.constant 9.99999974E-6 : f32
    %264 = vector.broadcast %cst_128 : f32 to vector<2x1xf32>
    %265 = arith.addf %261, %264 : vector<2x1xf32>
    %266 = math.rsqrt %265 : vector<2x1xf32>
    %267 = vector.broadcast %266 : vector<2x1xf32> to vector<2x32xf32>
    %268 = arith.mulf %263, %267 : vector<2x32xf32>
    %269 = vector.broadcast %174 : vector<1x32xf32> to vector<2x32xf32>
    %270 = arith.mulf %268, %269 : vector<2x32xf32>
    %271 = vector.broadcast %176 : vector<1x32xf32> to vector<2x32xf32>
    %272 = arith.addf %270, %271 : vector<2x32xf32>
    %273 = arith.truncf %272 : vector<2x32xf32> to vector<2x32xbf16>
    %c1_129 = arith.constant 1 : index
    %c0_130 = arith.constant 0 : index
    %c128_131 = arith.constant 128 : index
    %274 = vector.load %arg1[%c1_129, %c0_130, %c128_131] : memref<2x32x512xbf16, #tpu.memory_space<vmem>>, vector<1x32x128xbf16>
    %275 = vector.shape_cast %274 : vector<1x32x128xbf16> to vector<32x128xbf16>
    %cst_132 = arith.constant dense<0.000000e+00> : vector<2x128xf32>
    %276 = tpu.matmul %273, %275, %cst_132 {dimension_numbers = #tpu.dot_dimension_numbers<[1], [0], [0], [1], [0, 0, 1, 1], [], []>} : vector<2x32xbf16>, vector<32x128xbf16>, vector<2x128xf32> -> vector<2x128xf32>
    %277 = vector.broadcast %178 : vector<1x128xf32> to vector<2x128xf32>
    %278 = arith.addf %276, %277 : vector<2x128xf32>
    %cst_133 = arith.constant 5.000000e-01 : f32
    %279 = vector.broadcast %cst_133 : f32 to vector<2x128xf32>
    %280 = arith.mulf %279, %278 : vector<2x128xf32>
    %cst_134 = arith.constant 4.471500e-02 : f32
    %281 = vector.broadcast %cst_134 : f32 to vector<2x128xf32>
    %282 = arith.mulf %281, %278 : vector<2x128xf32>
    %283 = arith.mulf %282, %278 : vector<2x128xf32>
    %284 = arith.mulf %283, %278 : vector<2x128xf32>
    %285 = arith.addf %278, %284 : vector<2x128xf32>
    %cst_135 = arith.constant 0.797884583 : f32
    %286 = vector.broadcast %cst_135 : f32 to vector<2x128xf32>
    %287 = arith.mulf %286, %285 : vector<2x128xf32>
    %288 = math.tanh %287 : vector<2x128xf32>
    %cst_136 = arith.constant 1.000000e+00 : f32
    %289 = vector.broadcast %cst_136 : f32 to vector<2x128xf32>
    %290 = arith.addf %289, %288 : vector<2x128xf32>
    %291 = arith.mulf %280, %290 : vector<2x128xf32>
    %292 = arith.truncf %291 : vector<2x128xf32> to vector<2x128xbf16>
    %c1_137 = arith.constant 1 : index
    %c0_138 = arith.constant 0 : index
    %c0_139 = arith.constant 0 : index
    %293 = vector.load %arg2[%c1_137, %c0_138, %c0_139] : memref<2x128x32xbf16, #tpu.memory_space<vmem>>, vector<1x128x32xbf16>
    %294 = vector.shape_cast %293 : vector<1x128x32xbf16> to vector<128x32xbf16>
    %cst_140 = arith.constant dense<0.000000e+00> : vector<2x32xf32>
    %295 = tpu.matmul %292, %294, %cst_140 {dimension_numbers = #tpu.dot_dimension_numbers<[1], [0], [0], [1], [0, 0, 1, 1], [], []>} : vector<2x128xbf16>, vector<128x32xbf16>, vector<2x32xf32> -> vector<2x32xf32>
    %296 = vector.broadcast %180 : vector<1x32xf32> to vector<2x32xf32>
    %297 = arith.addf %295, %296 : vector<2x32xf32>
    %298 = arith.addf %272, %297 : vector<2x32xf32>
    %cst_141 = arith.constant dense<0.000000e+00> : vector<2xf32>
    %299 = vector.multi_reduction <add>, %298, %cst_141 [1] : vector<2x32xf32> to vector<2xf32>
    %300 = vector.shape_cast %299 : vector<2xf32> to vector<2x1xf32>
    %cst_142 = arith.constant 3.200000e+01 : f32
    %301 = vector.broadcast %cst_142 : f32 to vector<2x1xf32>
    %302 = arith.divf %300, %301 : vector<2x1xf32>
    %303 = vector.broadcast %302 : vector<2x1xf32> to vector<2x32xf32>
    %304 = arith.subf %298, %303 : vector<2x32xf32>
    %305 = vector.broadcast %302 : vector<2x1xf32> to vector<2x32xf32>
    %306 = arith.subf %298, %305 : vector<2x32xf32>
    %307 = arith.mulf %304, %306 : vector<2x32xf32>
    %cst_143 = arith.constant dense<0.000000e+00> : vector<2xf32>
    %308 = vector.multi_reduction <add>, %307, %cst_143 [1] : vector<2x32xf32> to vector<2xf32>
    %309 = vector.shape_cast %308 : vector<2xf32> to vector<2x1xf32>
    %cst_144 = arith.constant 3.200000e+01 : f32
    %310 = vector.broadcast %cst_144 : f32 to vector<2x1xf32>
    %311 = arith.divf %309, %310 : vector<2x1xf32>
    %312 = vector.broadcast %302 : vector<2x1xf32> to vector<2x32xf32>
    %313 = arith.subf %298, %312 : vector<2x32xf32>
    %cst_145 = arith.constant 9.99999974E-6 : f32
    %314 = vector.broadcast %cst_145 : f32 to vector<2x1xf32>
    %315 = arith.addf %311, %314 : vector<2x1xf32>
    %316 = math.rsqrt %315 : vector<2x1xf32>
    %317 = vector.broadcast %316 : vector<2x1xf32> to vector<2x32xf32>
    %318 = arith.mulf %313, %317 : vector<2x32xf32>
    %319 = vector.broadcast %182 : vector<1x32xf32> to vector<2x32xf32>
    %320 = arith.mulf %318, %319 : vector<2x32xf32>
    %321 = vector.broadcast %184 : vector<1x32xf32> to vector<2x32xf32>
    %322 = arith.addf %320, %321 : vector<2x32xf32>
    %323 = arith.truncf %322 : vector<2x32xf32> to vector<2x32xbf16>
    %c1_146 = arith.constant 1 : index
    %c0_147 = arith.constant 0 : index
    %c384_148 = arith.constant 384 : index
    %324 = vector.load %arg1[%c1_146, %c0_147, %c384_148] : memref<2x32x512xbf16, #tpu.memory_space<vmem>>, vector<1x32x32xbf16>
    %325 = vector.shape_cast %324 : vector<1x32x32xbf16> to vector<32x32xbf16>
    %cst_149 = arith.constant dense<0.000000e+00> : vector<2x32xf32>
    %326 = tpu.matmul %323, %325, %cst_149 {dimension_numbers = #tpu.dot_dimension_numbers<[1], [0], [0], [1], [0, 0, 1, 1], [], []>} : vector<2x32xbf16>, vector<32x32xbf16>, vector<2x32xf32> -> vector<2x32xf32>
    %327 = vector.broadcast %186 : vector<1x32xf32> to vector<2x32xf32>
    %328 = arith.addf %326, %327 : vector<2x32xf32>
    %329 = math.tanh %328 : vector<2x32xf32>
    %cst_150 = arith.constant dense<0.000000e+00> : vector<2x2xf32>
    %330 = tpu.matmul %164, %329, %cst_150 {dimension_numbers = #tpu.dot_dimension_numbers<[1], [1], [0], [0], [0, 0, 1, 0], [], []>} : vector<2x32xf32>, vector<2x32xf32>, vector<2x2xf32> -> vector<2x2xf32>
    %cst_151 = arith.constant dense<0xFF800000> : vector<2xf32>
    %331 = vector.multi_reduction <maximumf>, %330, %cst_151 [1] : vector<2x2xf32> to vector<2xf32>
    %332 = vector.shape_cast %331 : vector<2xf32> to vector<2x1xf32>
    %333 = vector.broadcast %332 : vector<2x1xf32> to vector<2x2xf32>
    %334 = arith.subf %330, %333 : vector<2x2xf32>
    %335 = math.exp %334 : vector<2x2xf32>
    %cst_152 = arith.constant dense<0.000000e+00> : vector<2xf32>
    %336 = vector.multi_reduction <add>, %335, %cst_152 [1] : vector<2x2xf32> to vector<2xf32>
    %337 = vector.shape_cast %336 : vector<2xf32> to vector<2x1xf32>
    %338 = math.log %337 : vector<2x1xf32>
    %339 = vector.broadcast %338 : vector<2x1xf32> to vector<2x2xf32>
    %340 = arith.subf %334, %339 : vector<2x2xf32>
    %341 = tpu.iota {dimensions = array<i32: 0>} : vector<2x2xi32>
    %342 = tpu.iota {dimensions = array<i32: 1>} : vector<2x2xi32>
    %343 = arith.cmpi eq, %341, %342 : vector<2x2xi32>
    %344 = arith.extui %343 : vector<2x2xi1> to vector<2x2xi32>
    %345 = arith.sitofp %344 : vector<2x2xi32> to vector<2x2xf32>
    %346 = arith.mulf %340, %345 : vector<2x2xf32>
    %cst_153 = arith.constant dense<0.000000e+00> : vector<2xf32>
    %347 = vector.multi_reduction <add>, %346, %cst_153 [1] : vector<2x2xf32> to vector<2xf32>
    %348 = vector.shape_cast %347 : vector<2xf32> to vector<2x1xf32>
    %cst_154 = arith.constant 0.000000e+00 : f32
    %349 = vector.broadcast %cst_154 : f32 to vector<2x1xf32>
    %350 = arith.subf %349, %348 : vector<2x1xf32>
    %cst_155 = arith.constant dense<0.000000e+00> : vector<1xf32>
    %351 = vector.multi_reduction <add>, %350, %cst_155 [0] : vector<2x1xf32> to vector<1xf32>
    %352 = vector.shape_cast %351 : vector<1xf32> to vector<1x1xf32>
    %cst_156 = arith.constant 5.000000e-01 : f32
    %353 = vector.broadcast %cst_156 : f32 to vector<1x1xf32>
    %354 = arith.mulf %352, %353 : vector<1x1xf32>
    %cst_157 = arith.constant 0.000000e+00 : f32
    %355 = vector.broadcast %cst_157 : f32 to vector<8x128xf32>
    %c0_158 = arith.constant 0 : index
    %c0_159 = arith.constant 0 : index
    %356 = vector.load %arg4[%c0_158, %c0_159] : memref<8x128xf32, #tpu.memory_space<vmem>>, vector<8x128xf32>
    tpu.vector_store %arg4[%c0_158, %c0_159], %355 {strides = array<i32>} : memref<8x128xf32, #tpu.memory_space<vmem>>, vector<8x128xf32>,
    %357 = vector.shape_cast %354 : vector<1x1xf32> to vector<1x1xf32>
    %358 = vector.broadcast %357 : vector<1x1xf32> to vector<2x1xf32>
    %359 = tpu.concatenate %330, %358 in 1 : vector<2x2xf32>, vector<2x1xf32> -> vector<2x3xf32>
    %c0_160 = arith.constant 0 : index
    %c0_161 = arith.constant 0 : index
    %360 = vector.load %arg4[%c0_160, %c0_161] : memref<8x128xf32, #tpu.memory_space<vmem>>, vector<2x3xf32>
    tpu.vector_store %arg4[%c0_160, %c0_161], %359 {strides = array<i32>} : memref<8x128xf32, #tpu.memory_space<vmem>>, vector<2x3xf32>,
    return
  }
}

</mosaic_0001>

<bundles_post_ra>
// kernel: biencoder_forward.1
= control target key start
LH: loop header
LB: loop body
LE: loop exit
PB: predicated region body
PF: predicated region fallthrough
CT: control target
= control target key end

     0   :  { %vm33_vm0 = vcmask 261120   ;;  %vm40_vm1 = vcmask 254976   ;;  %v1850_v49 = vmov 0.0|0.0   ;;  %vm1851_vm2 = vmmov 0   ;;  %s1853_s5 = smov 96   ;;  %s1854_s8 = smov 64   ;;  %s2203_s0 = inlined_call_operand.vmem [shape: f32[2,20,32], index: 0, kind: input, shape index: {}]   ;;  %s2204_s1 = inlined_call_operand.vmem [shape: bf16[2,32,512], index: 1, kind: input, shape index: {}]   ;;  %s2205_s3 = inlined_call_operand.vmem [shape: f32[2,16,128], index: 3, kind: input, shape index: {}]   ;;  %s2206_s2 = inlined_call_operand.vmem [shape: bf16[2,128,32], index: 2, kind: input, shape index: {}]   ;;  %s2207_s4 = inlined_call_operand.vmem [shape: f32[8,128], index: 4, kind: output, shape index: {}]  }
   0x1   :  { %v29_v0 = vld [vmem:[%s2203_s0] sm:$0xff]  ;;  %v31_v1 = vld [vmem:[%s2203_s0 + $0x10] sm:$0x3]  ;;  %v30_v2 = vld [vmem:[%s2203_s0 + $0x8] sm:$0xff]  ;;  %v1852_v51 = vmov 0.0   ;;  %vm250_vm4 = vcmask 123904  }
   0x2   :  { %v34_v3 = vsel %vm33_vm0, %v29_v0, 0.0  ;;  %v41_v4 = vsel %vm40_vm1, %v31_v1, 0.0  ;;  %v37_v5 = vsel %vm33_vm0, %v30_v2, 0.0  ;;  %v1778_v21 = vld [vmem:[%s2204_s1] ss:$16 sps:$4 sm:$0xff]   ;;  %1641 = vmatprep.subr.bf16.mxu0 %v1852_v51  ;;  %1645 = vmatprep.mubr.msk.bf16.mxu0 %vm1851_vm2, %v1852_v51  ;;  %vm1925_vm3 = vmpackc.low %vm33_vm0, %vm33_vm0  ;;  %vm268_vm5 = vcmask 130048   ;;  %1433 = vst [vmem:[%s2207_s4] sm:$0xff] %v1852_v51 }
   0x3   :  { %35 = vadd.xlane.f32.xlu0 %v34_v3  ;;  %42 = vadd.xlane.f32.xlu1 %v41_v4  ;;  %v1779_v22 = vld [vmem:[%s2204_s1 + $0x20] ss:$16 sps:$4 sm:$0xff]   ;;  %vm1399_vm6 = vcmask 9216   ;;  %vm1424_vm8 = vcmask 1041408   ;;  %vm1434_vm9 = vcmask 15360   ;;  %vm1436_vm10 = vcmask 17408  }
   0x4   :  { %1620 = vmatprep.subr.bf16.mxu1 %v1778_v21  ;;  %v1442_v34 = vld [vmem:[%s2205_s3] ss:$0 sm:$0xff]  ;;  %v1443_v40 = vld [vmem:[%s2205_s3 + $0x1] ss:$0 sm:$0xff]  ;;  %v1444_v48 = vld [vmem:[%s2205_s3 + $0x2] ss:$0 sm:$0xff] }
   0x5   :  { %1621 = vmatpush3.bf16.msra.mxu1 %v1778_v21 }
   0x6   :  { %1622 = vmatprep.subr.bf16.mxu1 %v1779_v22 }
   0x7   :  { %38 = vadd.xlane.f32.xlu0 %v37_v5 }
   0x9   :  { %1623 = vmatpush3.bf16.msra.mxu1 %v1779_v22 }
   0xa   :  { %1755 = vmatprep.subr.bf16.mxu1 %v1850_v49 }
  0x90   :  { %v36_v6 = vpop.xlane.xlu0 %35  ;;  %v43_v7 = vpop.xlane.xlu1 %42 }
  0x91   :  { %v45_v8 = vmul.f32 0.03125, %v36_v6  ;;  %v47_v9 = vmul.f32 0.03125, %v43_v7 }
  0x93   :  { %v48_v10 = vsub.f32 %v29_v0, %v45_v8  ;;  %v50_v11 = vsub.f32 %v31_v1, %v47_v9 }
  0x94   :  { %v39_v12 = vpop.xlane.xlu0 %38 }
  0x95   :  { %v46_v13 = vmul.f32 0.03125, %v39_v12  ;;  %v51_v14 = vmul.f32 %v48_v10, %v48_v10  ;;  %v53_v15 = vmul.f32 %v50_v11, %v50_v11  ;;  %v1780_v12 = vld [vmem:[%s2204_s1 + $0x8] ss:$16 sps:$4 sm:$0xff]  }
  0x96   :  { %1642 = vmatpush3.bf16.msra.mxu0 %v1780_v12  ;;  %v1491_v12 = vld [vmem:[%s2203_s0 + $0x28] sm:$0x3] }
  0x97   :  { %v49_v16 = vsub.f32 %v30_v2, %v46_v13  ;;  %v54_v17 = vsel %vm33_vm0, %v51_v14, 0.0  ;;  %v60_v18 = vsel %vm40_vm1, %v53_v15, 0.0  ;;  %v32_v2 = vld [vmem:[%s2203_s0 + $0x12] sm:$0x3]  ;;  %1643 = vmatprep.subr.bf16.mxu0 %v1852_v51 }
  0x98   :  { %55 = vadd.xlane.f32.xlu1 %v54_v17 }
  0x99   :  { %v52_v19 = vmul.f32 %v49_v16, %v49_v16 }
  0x9b   :  { %v57_v20 = vsel %vm33_vm0, %v52_v19, 0.0 }
  0x9c   :  { %61 = vadd.xlane.f32.xlu1 %v60_v18  ;;  %58 = vadd.xlane.f32.xlu0 %v57_v20  ;;  %v1781_v18 = vld [vmem:[%s2204_s1 + $0x28] ss:$16 sps:$4 sm:$0xff]  }
  0x9d   :  { %1644 = vmatpush3.bf16.msra.mxu0 %v1781_v18 }
  0x9e   :  { %1657 = vmatprep.subr.bf16.mxu0 %v1852_v51 }
 0x125   :  { %v56_v23 = vpop.xlane.xlu1 %55 }
 0x126   :  { %v63_v24 = vmul.f32 0.03125, %v56_v23 }
 0x128   :  { %v66_v25 = vadd.f32 1e-05, %v63_v24  ;;  %v1453_v24 = vld [vmem:[%s2205_s3 + $0x3] ss:$0 sm:$0xff] }
 0x129   :  { %v62_v26 = vpop.xlane.xlu1 %61  ;;  %v59_v27 = vpop.xlane.xlu0 %58 }
 0x12a   :  { %1810 = vrsqrt.f32 %v66_v25  ;;  %v65_v28 = vmul.f32 0.03125, %v62_v26  ;;  %v64_v29 = vmul.f32 0.03125, %v59_v27 }
 0x12c   :  { %v68_v30 = vadd.f32 1e-05, %v65_v28  ;;  %v67_v31 = vadd.f32 1e-05, %v64_v29 }
 0x12e   :  { %1812 = vrsqrt.f32 %v68_v30 }
 0x12f   :  { %1814 = vrsqrt.f32 %v67_v31 }
 0x134   :  { %v1811_v32 = vpop.eup %1810 }
 0x135   :  { %v72_v33 = vmul.f32 %v1811_v32, %v48_v10 }
 0x137   :  { %v79_v39 = vmul.f32 %v1442_v34, %v72_v33 }
 0x138   :  { %v1813_v35 = vpop.eup %1812 }
 0x139   :  { %v1815_v36 = vpop.eup %1814  ;;  %v74_v37 = vmul.f32 %v1813_v35, %v50_v11  ;;  %v86_v44 = vadd.f32 %v1443_v40, %v79_v39  ;;  %v1784_v39 = vld [vmem:[%s2206_s2] sm:$0xff]  }
 0x13a   :  { %v73_v38 = vmul.f32 %v1815_v36, %v49_v16 }
 0x13b   :  { %v81_v41 = vmul.f32 %v1442_v34, %v74_v37  ;;  %v1782_v37 = vld [vmem:[%s2204_s1 + $0x4] ss:$16 sps:$4 sm:$0xff]  }
 0x13c   :  { %v80_v42 = vmul.f32 %v1442_v34, %v73_v38  ;;  %v1783_v38 = vld [vmem:[%s2204_s1 + $0x24] ss:$16 sps:$4 sm:$0xff]  }
 0x13d   :  { %v1907_v43 = vadd.f32 %v1443_v40, %v81_v41 }
 0x13e   :  { %v87_v45 = vadd.f32 %v1443_v40, %v80_v42 }
 0x13f   :  { %v90_v46 = vpack.c.bf16 %v1907_v43, %v1907_v43 }
 0x140   :  { %v89_v47 = vpack.c.bf16 %v87_v45, %v86_v44  ;;  %v1457_v44 = vld [vmem:[%s2205_s3 + $0x4] ss:$0 sm:$0xff] }
 0x142   :  { %1624 = vmatprep.mubr.msk.bf16.mxu1 %vm33_vm0, %v89_v47 }
 0x143   :  { %1625 = vmatmul.mubr.msk.bf16.vlgmr.msra.gmra.mrb[0].mxu1 %vm33_vm0, %v90_v46  ;;  %v1458_v46 = vld [vmem:[%s2205_s3 + $0x5] ss:$0 sm:$0xff] }
 0x144   :  { %1632 = vmatprep.mubr.msk.f32.mxu1 %vm1851_vm2, %v1852_v51 }
 0x216   :  { %v1626_v50 = vpop.f32.mrb[0].mxu1 }
 0x217   :  { %v160_v52 = vadd.f32 %v1626_v50, %v1444_v48  ;;  %v151_v53 = vpop.f32.mrb[1].mxu1 }
 0x218   :  { %v1627_v54 = vpop.f32.mrb[2].mxu1  ;;  %v152_v56 = vadd.f32 %v1444_v48, %v151_v53  ;;  %v1786_v53 = vld [vmem:[%s2206_s2 + $0x10] sm:$0xff]  }
 0x219   :  { %v154_v55 = vpop.f32.mrb[3].mxu1  ;;  %v1787_v54 = vld [vmem:[%s2206_s2 + $0x18] sm:$0xff]  }
 0x21a   :  { %v155_v57 = vadd.f32 %v1444_v48, %v154_v55  ;;  %v1788_v55 = vld [vmem:[%s2206_s2 + $0x20] sm:$0xff]  }
 0x21c   :  { %v1768_v58 = vpack.i.bf16 %v155_v57, %v152_v56  ;;  %v263_v59 = vpack.c.bf16 %v155_v57, %v152_v56  ;;  %v1789_v56 = vld [vmem:[%s2206_s2 + $0x28] sm:$0xff]   ;;  %v1790_v57 = vld [vmem:[%s2206_s2 + $0x30] sm:$0xff]  }
 0x21e   :  { %1769 = vrot.lane.b32.xlu0 %v1768_v58, %s1853_s5  ;;  %v1791_v58 = vld [vmem:[%s2206_s2 + $0x38] sm:$0xff]  }
 0x290   :  { %v1770_v60 = vpop.permute.xlu0 %1769 }
 0x291   :  { %v1772_v61 = vunpack.i.h.bf16 %v1770_v60  ;;  %v1771_v62 = vunpack.i.l.bf16 %v1770_v60 }
 0x293   :  { %v1756_v0 = vpack.c.bf16 %v1772_v61, %v1771_v62 }
 0x295   :  { %1758 = vmatpush3.bf16.xpose.msk.msra.mxu1 %vm1925_vm3, %v1756_v0 }
 0x296   :  { %1635 = vmatprep.subr.bf16.mxu1 %v1852_v51 }
 0x29c   :  { %1633 = vmatmul.mubr.msk.f32.vlgmr.msra.gmra.mrb[4].mxu1 %vm33_vm0, %v160_v52  ;;  %v1785_v52 = vld [vmem:[%s2206_s2 + $0x8] sm:$0xff]  }
 0x29d   :  { %1637 = vmatprep.mubr.msk.bf16.mxu1 %vm1851_vm2, %v1852_v51 }
 0x36f   :  { %v244_v1 = vpop.f32.mrb[4].mxu1 }
 0x370   :  { %v248_v3 = vmul.f32 0.17677669, %v244_v1  ;;  %v1634_v4 = vpop.f32.mrb[5].mxu1 }
 0x372   :  { %v249_v5 = vadd.f32 %v248_v3, %v32_v2 }
 0x374   :  { %v251_v6 = vsel %vm250_vm4, %v249_v5, -inf }
 0x375   :  { %252 = vmax.xlane.f32.xlu1 %v251_v6 }
 0x402   :  { %v253_v7 = vpop.xlane.xlu1 %252 }
 0x403   :  { %v254_v8 = vsub.f32 %v249_v5, %v253_v7 }
 0x405   :  { %v255_v9 = vmul.f32 1.442695, %v254_v8 }
 0x407   :  { %1816 = vpow2.f32 %v255_v9 }
 0x411   :  { %v1817_v10 = vpop.eup %1816 }
 0x412   :  { %v257_v11 = vsel %vm250_vm4, %v1817_v10, 0.0 }
 0x413   :  { %258 = vadd.xlane.f32.xlu1 %v257_v11 }
 0x424   :  { %265 = vrot.lane.b32.xlu1 %v263_v59, %s1854_s8  ;;  %v1459_v59 = vld [vmem:[%s2205_s3 + $0x6] ss:$0 sm:$0xff] }
 0x4a0   :  { %v259_v13 = vpop.xlane.xlu1 %258 }
 0x4a1   :  { %1818 = vrcp.f32 %v259_v13  ;;  %v694_v13 = vsel %vm40_vm1, %v1491_v12, 0.0 }
 0x4a4   :  { %v266_v14 = vpop.permute.xlu1 %265 }
 0x4a5   :  { %1636 = vmatpush3.bf16.msra.mxu1 %v266_v14  ;;  %v1463_v14 = vld [vmem:[%s2205_s3 + $0x7] ss:$0 sm:$0xff] }
 0x4a6   :  { %1649 = vmatprep.subr.bf16.mxu1 %v1852_v51 }
 0x4ab   :  { %v1819_v15 = vpop.eup %1818 }
 0x4ac   :  { %v261_v16 = vmul.f32 %v1819_v15, %v1817_v10 }
 0x4ae   :  { %v262_v17 = vpack.c.bf16 %v261_v16, %v261_v16 }
 0x4b0   :  { %1638 = vmatmul.mubr.msk.bf16.vlgmr.msra.gmra.mrb[8].mxu1 %vm268_vm5, %v262_v17 }
 0x4b1   :  { %1653 = vmatprep.mubr.msk.bf16.mxu1 %vm1851_vm2, %v1852_v51  ;;  %1650 = vmatpush3.bf16.msra.mxu1 %v1782_v37 }
 0x4b2   :  { %1651 = vmatprep.subr.bf16.mxu1 %v1852_v51 }
 0x4b5   :  { %1652 = vmatpush3.bf16.msra.mxu1 %v1783_v38 }
 0x4b6   :  { %1677 = vmatprep.subr.bf16.mxu1 %v1852_v51 }
 0x583   :  { %v306_v19 = vpop.f32.mrb[8].mxu1 }
 0x584   :  { %v312_v20 = vpack.c.bf16 %v306_v19, %v306_v19  ;;  %v1639_v21 = vpop.f32.mrb[9].mxu1 }
 0x585   :  { %v309_v22 = vpop.f32.mrb[10].mxu1  ;;  %v1489_v21 = vld [vmem:[%s2203_s0 + $0x18] sm:$0xff] }
 0x586   :  { %v1640_v23 = vpop.f32.mrb[11].mxu1  ;;  %1646 = vmatmul.mubr.msk.bf16.vlgmr.msra.gmra.mrb[0].mxu0 %vm33_vm0, %v312_v20 }
 0x587   :  { %1673 = vmatprep.mubr.msk.bf16.mxu0 %vm1851_vm2, %v1852_v51  ;;  %1658 = vmatpush3.bf16.msra.mxu0 %v1784_v39  ;;  %v688_v23 = vsel %vm33_vm0, %v1489_v21, 0.0 }
 0x588   :  { %1659 = vmatprep.subr.bf16.mxu0 %v1852_v51 }
 0x58b   :  { %1660 = vmatpush3.bf16.msra.mxu0 %v1785_v52 }
 0x58c   :  { %1661 = vmatprep.subr.bf16.mxu0 %v1852_v51 }
 0x58f   :  { %1662 = vmatpush3.bf16.msra.mxu0 %v1786_v53 }
 0x590   :  { %1663 = vmatprep.subr.bf16.mxu0 %v1852_v51 }
 0x593   :  { %1664 = vmatpush3.bf16.msra.mxu0 %v1787_v54 }
 0x594   :  { %1665 = vmatprep.subr.bf16.mxu0 %v1852_v51 }
 0x597   :  { %1666 = vmatpush3.bf16.msra.mxu0 %v1788_v55 }
 0x598   :  { %1667 = vmatprep.subr.bf16.mxu0 %v1852_v51 }
 0x59b   :  { %1668 = vmatpush3.bf16.msra.mxu0 %v1789_v56 }
 0x59c   :  { %1669 = vmatprep.subr.bf16.mxu0 %v1852_v51 }
 0x59f   :  { %1670 = vmatpush3.bf16.msra.mxu0 %v1790_v57 }
 0x5a0   :  { %1671 = vmatprep.subr.bf16.mxu0 %v1852_v51 }
 0x5a3   :  { %1672 = vmatpush3.bf16.msra.mxu0 %v1791_v58 }
 0x5a4   :  { %1706 = vmatprep.subr.bf16.mxu0 %v1852_v51 }
 0x659   :  { %v370_v25 = vpop.f32.mrb[0].mxu0 }
 0x65a   :  { %v371_v26 = vadd.f32 %v1453_v24, %v370_v25  ;;  %v1647_v27 = vpop.f32.mrb[1].mxu0  ;;  %v1490_v24 = vld [vmem:[%s2203_s0 + $0x20] sm:$0xff] }
 0x65b   :  { %v373_v28 = vpop.f32.mrb[2].mxu0  ;;  %v691_v25 = vsel %vm33_vm0, %v1490_v24, 0.0 }
 0x65c   :  { %v1648_v29 = vpop.f32.mrb[3].mxu0  ;;  %v376_v30 = vadd.f32 %v371_v26, %v1907_v43 }
 0x65e   :  { %v377_v31 = vsel %vm40_vm1, %v376_v30, 0.0 }
 0x65f   :  { %378 = vadd.xlane.f32.xlu0 %v377_v31 }
 0x6ec   :  { %v379_v32 = vpop.xlane.xlu0 %378 }
 0x6ed   :  { %v380_v33 = vmul.f32 0.03125, %v379_v32 }
 0x6ef   :  { %v381_v34 = vsub.f32 %v376_v30, %v380_v33 }
 0x6f1   :  { %v382_v35 = vmul.f32 %v381_v34, %v381_v34 }
 0x6f3   :  { %v383_v36 = vsel %vm40_vm1, %v382_v35, 0.0 }
 0x6f4   :  { %384 = vadd.xlane.f32.xlu1 %v383_v36 }
 0x6f8   :  { %695 = vadd.xlane.f32.xlu1 %v694_v13 }
 0x781   :  { %v385_v40 = vpop.xlane.xlu1 %384 }
 0x782   :  { %v386_v41 = vmul.f32 0.03125, %v385_v40 }
 0x784   :  { %v387_v42 = vadd.f32 1e-05, %v386_v41 }
 0x785   :  { %v696_v26 = vpop.xlane.xlu1 %695 }
 0x786   :  { %1820 = vrsqrt.f32 %v387_v42  ;;  %v699_v29 = vmul.f32 0.03125, %v696_v26 }
 0x788   :  { %v702_v33 = vsub.f32 %v1491_v12, %v699_v29 }
 0x78a   :  { %v705_v40 = vmul.f32 %v702_v33, %v702_v33 }
 0x790   :  { %v1821_v43 = vpop.eup %1820 }
 0x791   :  { %v389_v45 = vmul.f32 %v1821_v43, %v381_v34  ;;  %v712_v43 = vsel %vm40_vm1, %v705_v40, 0.0 }
 0x793   :  { %v394_v47 = vmul.f32 %v1457_v44, %v389_v45 }
 0x795   :  { %v399_v48 = vadd.f32 %v1458_v46, %v394_v47  ;;  %v1792_v46 = vld [vmem:[%s2204_s1 + $0xc] ss:$16 sps:$4 sm:$0xff]  }
 0x796   :  { %v1793_v47 = vld [vmem:[%s2204_s1 + $0x2c] ss:$16 sps:$4 sm:$0xff]  }
 0x797   :  { %v400_v50 = vpack.c.bf16 %v399_v48, %v399_v48 }
 0x799   :  { %1654 = vmatmul.mubr.msk.bf16.vlgmr.msra.gmra.mrb[12].mxu1 %vm33_vm0, %v400_v50 }
 0x79a   :  { %1681 = vmatprep.mubr.msk.bf16.mxu1 %vm1851_vm2, %v1852_v51  ;;  %1678 = vmatpush3.bf16.msra.mxu1 %v1792_v46 }
 0x79b   :  { %1679 = vmatprep.subr.bf16.mxu1 %v1852_v51 }
 0x79e   :  { %1680 = vmatpush3.bf16.msra.mxu1 %v1793_v47 }
 0x86c   :  { %v458_v60 = vpop.f32.mrb[12].mxu1 }
 0x86d   :  { %v459_v61 = vadd.f32 %v1459_v59, %v458_v60  ;;  %v1655_v62 = vpop.f32.mrb[13].mxu1 }
 0x86e   :  { %v461_v0 = vpop.f32.mrb[14].mxu1 }
 0x86f   :  { %v465_v1 = vmul.f32 0.044715, %v459_v61  ;;  %v1656_v2 = vpop.f32.mrb[15].mxu1  ;;  %v464_v8 = vmul.f32 0.5, %v459_v61 }
 0x871   :  { %v466_v3 = vmul.f32 %v465_v1, %v459_v61  ;;  %v1472_v1 = vld [vmem:[%s2205_s3 + $0x8] ss:$0 sm:$0xff] }
 0x873   :  { %v467_v4 = vmul.f32 %v466_v3, %v459_v61  ;;  %v1473_v3 = vld [vmem:[%s2205_s3 + $0x9] ss:$0 sm:$0xff] }
 0x875   :  { %v468_v5 = vadd.f32 %v467_v4, %v459_v61 }
 0x877   :  { %v469_v6 = vmul.f32 0.7978846, %v468_v5 }
 0x879   :  { %1822 = vtanh.f32 %v469_v6 }
 0x883   :  { %v1823_v7 = vpop.eup %1822 }
 0x884   :  { %v471_v9 = vadd.f32 1.0, %v1823_v7 }
 0x886   :  { %v472_v10 = vmul.f32 %v471_v9, %v464_v8  ;;  %v1795_v9 = vld [vmem:[%s2204_s1 + $0x60] ss:$16 sps:$4 sm:$0xff]  }
 0x888   :  { %v473_v11 = vpack.c.bf16 %v472_v10, %v472_v10  ;;  %v1493_v10 = vld [vmem:[%s2205_s3 + $0x10] ss:$0 sm:$0xff] }
 0x88a   :  { %1674 = vmatmul.mubr.bf16.vlgmr.msra.gmra.mrb[4].mxu0 %v473_v11 }
 0x88b   :  { %1710 = vmatprep.mubr.msk.bf16.mxu0 %vm1851_vm2, %v1852_v51 }
 0x95d   :  { %v576_v15 = vpop.f32.mrb[4].mxu0 }
 0x95e   :  { %v577_v16 = vadd.f32 %v1463_v14, %v576_v15  ;;  %v1675_v17 = vpop.f32.mrb[5].mxu0 }
 0x95f   :  { %v579_v18 = vpop.f32.mrb[6].mxu0 }
 0x960   :  { %v1676_v19 = vpop.f32.mrb[7].mxu0  ;;  %v582_v20 = vadd.f32 %v577_v16, %v399_v48  ;;  %v1794_v48 = vld [vmem:[%s2204_s1 + $0x40] ss:$16 sps:$4 sm:$0xff]  }
 0x961   :  { %1685 = vmatprep.subr.bf16.mxu1 %v1794_v48  ;;  %v1494_v16 = vld [vmem:[%s2205_s3 + $0x11] ss:$0 sm:$0xff] }
 0x962   :  { %v583_v22 = vsel %vm40_vm1, %v582_v20, 0.0 }
 0x963   :  { %584 = vadd.xlane.f32.xlu0 %v583_v22 }
 0x967   :  { %689 = vadd.xlane.f32.xlu0 %v688_v23 }
 0x96b   :  { %692 = vadd.xlane.f32.xlu0 %v691_v25 }
 0x9f0   :  { %v585_v27 = vpop.xlane.xlu0 %584 }
 0x9f1   :  { %v586_v28 = vmul.f32 0.03125, %v585_v27 }
 0x9f3   :  { %v587_v30 = vsub.f32 %v582_v20, %v586_v28  ;;  %v1499_v28 = vld [vmem:[%s2205_s3 + $0x12] ss:$0 sm:$0xff] }
 0x9f4   :  { %v690_v31 = vpop.xlane.xlu0 %689 }
 0x9f5   :  { %v697_v32 = vmul.f32 0.03125, %v690_v31  ;;  %v588_v34 = vmul.f32 %v587_v30, %v587_v30 }
 0x9f7   :  { %v700_v35 = vsub.f32 %v1489_v21, %v697_v32  ;;  %v589_v36 = vsel %vm40_vm1, %v588_v34, 0.0 }
 0x9f8   :  { %590 = vadd.xlane.f32.xlu0 %v589_v36  ;;  %v693_v37 = vpop.xlane.xlu0 %692 }
 0x9f9   :  { %v698_v38 = vmul.f32 0.03125, %v693_v37  ;;  %v703_v39 = vmul.f32 %v700_v35, %v700_v35 }
 0x9fb   :  { %v701_v41 = vsub.f32 %v1490_v24, %v698_v38  ;;  %v706_v42 = vsel %vm33_vm0, %v703_v39, 0.0 }
 0x9fc   :  { %707 = vadd.xlane.f32.xlu1 %v706_v42  ;;  %v1492_v42 = vld [vmem:[%s2203_s0 + $0x2a] sm:$0x3] }
 0x9fd   :  { %v704_v44 = vmul.f32 %v701_v41, %v701_v41 }
 0x9ff   :  { %v709_v45 = vsel %vm33_vm0, %v704_v44, 0.0 }
 0xa00   :  { %713 = vadd.xlane.f32.xlu1 %v712_v43  ;;  %710 = vadd.xlane.f32.xlu0 %v709_v45 }
 0xa85   :  { %v591_v50 = vpop.xlane.xlu0 %590 }
 0xa86   :  { %v592_v52 = vmul.f32 0.03125, %v591_v50 }
 0xa88   :  { %v593_v53 = vadd.f32 1e-05, %v592_v52 }
 0xa89   :  { %v708_v54 = vpop.xlane.xlu1 %707 }
 0xa8a   :  { %1824 = vrsqrt.f32 %v593_v53  ;;  %v715_v55 = vmul.f32 0.03125, %v708_v54  ;;  %v1796_v53 = vld [vmem:[%s2204_s1 + $0x48] ss:$16 sps:$4 sm:$0xff]  }
 0xa8b   :  { %1707 = vmatpush3.bf16.msra.mxu0 %v1796_v53 }
 0xa8c   :  { %v718_v56 = vadd.f32 1e-05, %v715_v55  ;;  %1708 = vmatprep.subr.bf16.mxu0 %v1852_v51 }
 0xa8d   :  { %v714_v57 = vpop.xlane.xlu1 %713  ;;  %v711_v58 = vpop.xlane.xlu0 %710 }
 0xa8e   :  { %1826 = vrsqrt.f32 %v718_v56  ;;  %v717_v59 = vmul.f32 0.03125, %v714_v57  ;;  %v716_v60 = vmul.f32 0.03125, %v711_v58 }
 0xa90   :  { %v720_v61 = vadd.f32 1e-05, %v717_v59  ;;  %v719_v62 = vadd.f32 1e-05, %v716_v60  ;;  %v1797_v59 = vld [vmem:[%s2204_s1 + $0x68] ss:$16 sps:$4 sm:$0xff]  }
 0xa91   :  { %1709 = vmatpush3.bf16.msra.mxu0 %v1797_v59 }
 0xa92   :  { %1828 = vrsqrt.f32 %v720_v61  ;;  %1722 = vmatprep.subr.bf16.mxu0 %v1852_v51 }
 0xa93   :  { %1830 = vrsqrt.f32 %v719_v62 }
 0xa94   :  { %v1825_v0 = vpop.eup %1824 }
 0xa95   :  { %v595_v2 = vmul.f32 %v1825_v0, %v587_v30 }
 0xa97   :  { %v600_v4 = vmul.f32 %v1472_v1, %v595_v2  ;;  %v1512_v2 = vld [vmem:[%s2205_s3 + $0x13] ss:$0 sm:$0xff] }
 0xa98   :  { %v1827_v5 = vpop.eup %1826 }
 0xa99   :  { %v605_v6 = vadd.f32 %v1473_v3, %v600_v4  ;;  %v724_v7 = vmul.f32 %v1827_v5, %v700_v35 }
 0xa9b   :  { %v606_v8 = vpack.c.bf16 %v605_v6, %v605_v6  ;;  %v731_v15 = vmul.f32 %v1493_v10, %v724_v7 }
 0xa9c   :  { %v1829_v11 = vpop.eup %1828 }
 0xa9d   :  { %v1831_v12 = vpop.eup %1830  ;;  %v726_v13 = vmul.f32 %v1829_v11, %v702_v33  ;;  %1682 = vmatmul.mubr.msk.bf16.vlgmr.msra.gmra.mrb[16].mxu1 %vm33_vm0, %v606_v8  ;;  %v738_v20 = vadd.f32 %v1494_v16, %v731_v15  ;;  %v1798_v15 = vld [vmem:[%s2204_s1 + $0x44] ss:$16 sps:$4 sm:$0xff]  }
 0xa9e   :  { %v725_v14 = vmul.f32 %v1831_v12, %v701_v41  ;;  %1686 = vmatpush3.bf16.msra.mxu1 %v1794_v48 }
 0xa9f   :  { %1687 = vmatprep.subr.bf16.mxu1 %v1795_v9  ;;  %v733_v17 = vmul.f32 %v1493_v10, %v726_v13 }
 0xaa0   :  { %v732_v18 = vmul.f32 %v1493_v10, %v725_v14 }
 0xaa1   :  { %v2062_v19 = vadd.f32 %v1494_v16, %v733_v17  ;;  %v1800_v17 = vld [vmem:[%s2206_s2 + $0x40] sm:$0xff]  }
 0xaa2   :  { %1688 = vmatpush3.bf16.msra.mxu1 %v1795_v9  ;;  %v739_v21 = vadd.f32 %v1494_v16, %v732_v18  ;;  %v1799_v16 = vld [vmem:[%s2204_s1 + $0x64] ss:$16 sps:$4 sm:$0xff]  }
 0xaa3   :  { %v742_v22 = vpack.c.bf16 %v2062_v19, %v2062_v19  ;;  %1759 = vmatprep.subr.bf16.mxu1 %v1850_v49 }
 0xaa4   :  { %v741_v23 = vpack.c.bf16 %v739_v21, %v738_v20 }
 0xaa6   :  { %1689 = vmatprep.mubr.msk.bf16.mxu1 %vm33_vm0, %v741_v23 }
 0xaa7   :  { %1690 = vmatmul.mubr.msk.bf16.vlgmr.msra.gmra.mrb[20].mxu1 %vm33_vm0, %v742_v22  ;;  %v1516_v22 = vld [vmem:[%s2205_s3 + $0x14] ss:$0 sm:$0xff] }
 0xaa8   :  { %1697 = vmatprep.mubr.msk.f32.mxu1 %vm1851_vm2, %v1852_v51 }
 0xb70   :  { %v2071_v24 = vpop.f32.mrb[16].mxu1 }
 0xb71   :  { %v1683_v25 = vpop.f32.mrb[17].mxu1 }
 0xb72   :  { %v667_v26 = vpop.f32.mrb[18].mxu1  ;;  %v1517_v25 = vld [vmem:[%s2205_s3 + $0x15] ss:$0 sm:$0xff] }
 0xb73   :  { %v1684_v27 = vpop.f32.mrb[19].mxu1 }
 0xb7a   :  { %v1691_v29 = vpop.f32.mrb[20].mxu1 }
 0xb7b   :  { %v813_v30 = vadd.f32 %v1691_v29, %v1499_v28  ;;  %v804_v49 = vpop.f32.mrb[21].mxu1  ;;  %v1801_v29 = vld [vmem:[%s2206_s2 + $0x48] sm:$0xff]  }
 0xb7c   :  { %v1692_v31 = vpop.f32.mrb[22].mxu1  ;;  %v805_v33 = vadd.f32 %v1499_v28, %v804_v49  ;;  %v1803_v49 = vld [vmem:[%s2206_s2 + $0x58] sm:$0xff]  }
 0xb7d   :  { %v807_v32 = vpop.f32.mrb[23].mxu1  ;;  %v1804_v31 = vld [vmem:[%s2206_s2 + $0x60] sm:$0xff]  }
 0xb7e   :  { %v808_v34 = vadd.f32 %v1499_v28, %v807_v32  ;;  %v1805_v32 = vld [vmem:[%s2206_s2 + $0x68] sm:$0xff]  }
 0xb80   :  { %v1773_v35 = vpack.i.bf16 %v808_v34, %v805_v33  ;;  %v915_v36 = vpack.c.bf16 %v808_v34, %v805_v33  ;;  %v1806_v33 = vld [vmem:[%s2206_s2 + $0x70] sm:$0xff]   ;;  %v1807_v34 = vld [vmem:[%s2206_s2 + $0x78] sm:$0xff]  }
 0xb82   :  { %1774 = vrot.lane.b32.xlu0 %v1773_v35, %s1853_s5  ;;  %v1522_v35 = vld [vmem:[%s2205_s3 + $0x16] ss:$0 sm:$0xff] }
 0xbf4   :  { %v1775_v37 = vpop.permute.xlu0 %1774 }
 0xbf5   :  { %v1777_v38 = vunpack.i.h.bf16 %v1775_v37  ;;  %v1776_v39 = vunpack.i.l.bf16 %v1775_v37 }
 0xbf7   :  { %v1760_v40 = vpack.c.bf16 %v1777_v38, %v1776_v39 }
 0xbf9   :  { %1762 = vmatpush3.bf16.xpose.msk.msra.mxu1 %vm1925_vm3, %v1760_v40 }
 0xbfa   :  { %1700 = vmatprep.subr.bf16.mxu1 %v1852_v51 }
 0xc00   :  { %1698 = vmatmul.mubr.msk.f32.vlgmr.msra.gmra.mrb[6].mxu1 %vm33_vm0, %v813_v30  ;;  %v1802_v30 = vld [vmem:[%s2206_s2 + $0x50] sm:$0xff]  }
 0xc01   :  { %1702 = vmatprep.mubr.msk.bf16.mxu1 %vm1851_vm2, %v1852_v51 }
 0xcd3   :  { %v897_v41 = vpop.f32.mrb[6].mxu1 }
 0xcd4   :  { %v901_v43 = vmul.f32 0.17677669, %v897_v41  ;;  %v1699_v44 = vpop.f32.mrb[7].mxu1 }
 0xcd6   :  { %v902_v45 = vadd.f32 %v1492_v42, %v901_v43 }
 0xcd8   :  { %v903_v46 = vsel %vm250_vm4, %v902_v45, -inf }
 0xcd9   :  { %904 = vmax.xlane.f32.xlu1 %v903_v46 }
 0xd66   :  { %v905_v63 = vpop.xlane.xlu1 %904 }
 0xd67   :  { %v906_v47 = vsub.f32 %v902_v45, %v905_v63 }
 0xd69   :  { %v907_v48 = vmul.f32 1.442695, %v906_v47 }
 0xd6b   :  { %1832 = vpow2.f32 %v907_v48 }
 0xd75   :  { %v1833_v50 = vpop.eup %1832 }
 0xd76   :  { %v909_v52 = vsel %vm250_vm4, %v1833_v50, 0.0 }
 0xd77   :  { %910 = vadd.xlane.f32.xlu1 %v909_v52  ;;  %v1542_v52 = vld [vmem:[%s2205_s3 + $0x17] ss:$0 sm:$0xff] }
 0xd88   :  { %917 = vrot.lane.b32.xlu1 %v915_v36, %s1854_s8 }
 0xe04   :  { %v911_v54 = vpop.xlane.xlu1 %910 }
 0xe05   :  { %1834 = vrcp.f32 %v911_v54 }
 0xe08   :  { %v918_v55 = vpop.permute.xlu1 %917 }
 0xe09   :  { %1701 = vmatpush3.bf16.msra.mxu1 %v918_v55 }
 0xe0a   :  { %1714 = vmatprep.subr.bf16.mxu1 %v1852_v51 }
 0xe0f   :  { %v1835_v56 = vpop.eup %1834 }
 0xe10   :  { %v913_v57 = vmul.f32 %v1835_v56, %v1833_v50 }
 0xe12   :  { %v914_v58 = vpack.c.bf16 %v913_v57, %v913_v57 }
 0xe14   :  { %1703 = vmatmul.mubr.msk.bf16.vlgmr.msra.gmra.mrb[24].mxu1 %vm268_vm5, %v914_v58 }
 0xe15   :  { %1718 = vmatprep.mubr.msk.bf16.mxu1 %vm1851_vm2, %v1852_v51  ;;  %1715 = vmatpush3.bf16.msra.mxu1 %v1798_v15  ;;  %v1474_v15 = vld [vmem:[%s2205_s3 + $0xa] ss:$0 sm:$0xff] }
 0xe16   :  { %1716 = vmatprep.subr.bf16.mxu1 %v1852_v51 }
 0xe19   :  { %1717 = vmatpush3.bf16.msra.mxu1 %v1799_v16 }
 0xe1a   :  { %1742 = vmatprep.subr.bf16.mxu1 %v1852_v51 }
 0xee7   :  { %v957_v60 = vpop.f32.mrb[24].mxu1 }
 0xee8   :  { %v963_v61 = vpack.c.bf16 %v957_v60, %v957_v60  ;;  %v1704_v62 = vpop.f32.mrb[25].mxu1 }
 0xee9   :  { %v960_v0 = vpop.f32.mrb[26].mxu1 }
 0xeea   :  { %v1705_v1 = vpop.f32.mrb[27].mxu1  ;;  %1711 = vmatmul.mubr.msk.bf16.vlgmr.msra.gmra.mrb[8].mxu0 %vm33_vm0, %v963_v61 }
 0xeeb   :  { %1738 = vmatprep.mubr.msk.bf16.mxu0 %vm1851_vm2, %v1852_v51  ;;  %1723 = vmatpush3.bf16.msra.mxu0 %v1800_v17 }
 0xeec   :  { %1724 = vmatprep.subr.bf16.mxu0 %v1852_v51 }
 0xeef   :  { %1725 = vmatpush3.bf16.msra.mxu0 %v1801_v29 }
 0xef0   :  { %1726 = vmatprep.subr.bf16.mxu0 %v1852_v51 }
 0xef3   :  { %1727 = vmatpush3.bf16.msra.mxu0 %v1802_v30 }
 0xef4   :  { %1728 = vmatprep.subr.bf16.mxu0 %v1852_v51 }
 0xef7   :  { %1729 = vmatpush3.bf16.msra.mxu0 %v1803_v49 }
 0xef8   :  { %1730 = vmatprep.subr.bf16.mxu0 %v1852_v51 }
 0xefb   :  { %1731 = vmatpush3.bf16.msra.mxu0 %v1804_v31 }
 0xefc   :  { %1732 = vmatprep.subr.bf16.mxu0 %v1852_v51 }
 0xeff   :  { %1733 = vmatpush3.bf16.msra.mxu0 %v1805_v32  ;;  %v1412_v32 = vlaneseq }
 0xf00   :  { %1734 = vmatprep.subr.bf16.mxu0 %v1852_v51 }
 0xf03   :  { %1735 = vmatpush3.bf16.msra.mxu0 %v1806_v33  ;;  %v1413_v33 = vshrl.u32 %v1412_v32, 7 }
 0xf04   :  { %1736 = vmatprep.subr.bf16.mxu0 %v1852_v51 }
 0xf07   :  { %1737 = vmatpush3.bf16.msra.mxu0 %v1807_v34  ;;  %v1415_v34 = vand.u32 127, %v1412_v32 }
 0xf09   :  { %vm1416_vm7 = vcmp.eq.s32.totalorder %v1413_v33, %v1415_v34 }
 0xfbd   :  { %v1021_v3 = vpop.f32.mrb[8].mxu0 }
 0xfbe   :  { %v1022_v4 = vadd.f32 %v1512_v2, %v1021_v3  ;;  %v1712_v5 = vpop.f32.mrb[9].mxu0  ;;  %v1808_v2 = vld [vmem:[%s2204_s1 + $0x4c] ss:$16 sps:$4 sm:$0xff]  }
 0xfbf   :  { %v1024_v6 = vpop.f32.mrb[10].mxu0  ;;  %v1809_v3 = vld [vmem:[%s2204_s1 + $0x6c] ss:$16 sps:$4 sm:$0xff]  }
 0xfc0   :  { %v1713_v7 = vpop.f32.mrb[11].mxu0  ;;  %v1027_v8 = vadd.f32 %v1022_v4, %v2062_v19 }
 0xfc2   :  { %v1028_v9 = vsel %vm40_vm1, %v1027_v8, 0.0 }
 0xfc3   :  { %1029 = vadd.xlane.f32.xlu0 %v1028_v9 }
0x1050   :  { %v1030_v10 = vpop.xlane.xlu0 %1029 }
0x1051   :  { %v1031_v11 = vmul.f32 0.03125, %v1030_v10  ;;  %v1552_v10 = vld [vmem:[%s2205_s3 + $0x19] ss:$0 sm:$0xff] }
0x1053   :  { %v1032_v12 = vsub.f32 %v1027_v8, %v1031_v11  ;;  %v1551_v8 = vld [vmem:[%s2205_s3 + $0x18] ss:$0 sm:$0xff] }
0x1055   :  { %v1033_v13 = vmul.f32 %v1032_v12, %v1032_v12 }
0x1057   :  { %v1034_v14 = vsel %vm40_vm1, %v1033_v13, 0.0 }
0x1058   :  { %1035 = vadd.xlane.f32.xlu1 %v1034_v14  ;;  %v1557_v14 = vld [vmem:[%s2205_s3 + $0x1a] ss:$0 sm:$0xff] }
0x10e5   :  { %v1036_v18 = vpop.xlane.xlu1 %1035 }
0x10e6   :  { %v1037_v19 = vmul.f32 0.03125, %v1036_v18 }
0x10e8   :  { %v1038_v20 = vadd.f32 1e-05, %v1037_v19  ;;  %v665_v19 = vadd.f32 %v1474_v15, %v2071_v24 }
0x10ea   :  { %1836 = vrsqrt.f32 %v1038_v20 }
0x10f4   :  { %v1837_v21 = vpop.eup %1836 }
0x10f5   :  { %v1040_v23 = vmul.f32 %v1837_v21, %v1032_v12 }
0x10f7   :  { %v1045_v26 = vmul.f32 %v1516_v22, %v1040_v23 }
0x10f9   :  { %v1050_v27 = vadd.f32 %v1517_v25, %v1045_v26 }
0x10fb   :  { %v1051_v28 = vpack.c.bf16 %v1050_v27, %v1050_v27 }
0x10fd   :  { %1719 = vmatmul.mubr.msk.bf16.vlgmr.msra.gmra.mrb[28].mxu1 %vm33_vm0, %v1051_v28 }
0x10fe   :  { %1746 = vmatprep.mubr.msk.bf16.mxu1 %vm1851_vm2, %v1852_v51  ;;  %1743 = vmatpush3.bf16.msra.mxu1 %v1808_v2 }
0x10ff   :  { %1744 = vmatprep.subr.bf16.mxu1 %v1852_v51 }
0x1102   :  { %1745 = vmatpush3.bf16.msra.mxu1 %v1809_v3 }
0x1103   :  { %1750 = vmatprep.subr.mxu1 %v1852_v51 }
0x11d0   :  { %v1109_v36 = vpop.f32.mrb[28].mxu1 }
0x11d1   :  { %v1110_v37 = vadd.f32 %v1522_v35, %v1109_v36  ;;  %v1720_v38 = vpop.f32.mrb[29].mxu1 }
0x11d2   :  { %v1112_v39 = vpop.f32.mrb[30].mxu1 }
0x11d3   :  { %v1116_v40 = vmul.f32 0.044715, %v1110_v37  ;;  %v1721_v41 = vpop.f32.mrb[31].mxu1  ;;  %v1115_v63 = vmul.f32 0.5, %v1110_v37 }
0x11d5   :  { %v1117_v42 = vmul.f32 %v1116_v40, %v1110_v37 }
0x11d7   :  { %v1118_v43 = vmul.f32 %v1117_v42, %v1110_v37 }
0x11d9   :  { %v1119_v44 = vadd.f32 %v1118_v43, %v1110_v37  ;;  %v1563_v37 = vsel %vm1416_vm7, 1.0, %v1852_v51 }
0x11db   :  { %v1120_v45 = vmul.f32 0.7978846, %v1119_v44 }
0x11dd   :  { %1838 = vtanh.f32 %v1120_v45 }
0x11e7   :  { %v1839_v46 = vpop.eup %1838 }
0x11e8   :  { %v1122_v47 = vadd.f32 1.0, %v1839_v46 }
0x11ea   :  { %v1123_v48 = vmul.f32 %v1122_v47, %v1115_v63 }
0x11ec   :  { %v1124_v50 = vpack.c.bf16 %v1123_v48, %v1123_v48 }
0x11ee   :  { %1739 = vmatmul.mubr.bf16.vlgmr.msra.gmra.mrb[12].mxu0 %v1124_v50 }
0x12c1   :  { %v1228_v53 = vpop.f32.mrb[12].mxu0 }
0x12c2   :  { %v1229_v54 = vadd.f32 %v1542_v52, %v1228_v53  ;;  %v1740_v55 = vpop.f32.mrb[13].mxu0 }
0x12c3   :  { %v1231_v56 = vpop.f32.mrb[14].mxu0 }
0x12c4   :  { %v1741_v57 = vpop.f32.mrb[15].mxu0  ;;  %v1234_v58 = vadd.f32 %v1229_v54, %v1050_v27 }
0x12c6   :  { %v1235_v59 = vsel %vm40_vm1, %v1234_v58, 0.0 }
0x12c7   :  { %1236 = vadd.xlane.f32.xlu0 %v1235_v59 }
0x1354   :  { %v1237_v60 = vpop.xlane.xlu0 %1236 }
0x1355   :  { %v1238_v61 = vmul.f32 0.03125, %v1237_v60 }
0x1357   :  { %v1239_v62 = vsub.f32 %v1234_v58, %v1238_v61 }
0x1359   :  { %v1240_v0 = vmul.f32 %v1239_v62, %v1239_v62 }
0x135b   :  { %v1241_v1 = vsel %vm40_vm1, %v1240_v0, 0.0 }
0x135c   :  { %1242 = vadd.xlane.f32.xlu0 %v1241_v1 }
0x13e9   :  { %v1243_v4 = vpop.xlane.xlu0 %1242 }
0x13ea   :  { %v1244_v5 = vmul.f32 0.03125, %v1243_v4 }
0x13ec   :  { %v1245_v6 = vadd.f32 1e-05, %v1244_v5 }
0x13ee   :  { %1840 = vrsqrt.f32 %v1245_v6 }
0x13f8   :  { %v1841_v7 = vpop.eup %1840 }
0x13f9   :  { %v1247_v9 = vmul.f32 %v1841_v7, %v1239_v62 }
0x13fb   :  { %v1252_v11 = vmul.f32 %v1551_v8, %v1247_v9 }
0x13fd   :  { %v1257_v12 = vadd.f32 %v1552_v10, %v1252_v11 }
0x13ff   :  { %v1258_v13 = vpack.c.bf16 %v1257_v12, %v1257_v12 }
0x1401   :  { %1747 = vmatmul.mubr.msk.bf16.vlgmr.msra.gmra.mrb[32].mxu1 %vm33_vm0, %v1258_v13 }
0x1402   :  { %1752 = vmatprep.mubr.msk.f32.mxu1 %vm1851_vm2, %v1852_v51 }
0x14d4   :  { %v1316_v16 = vpop.f32.mrb[32].mxu1 }
0x14d5   :  { %v1317_v17 = vadd.f32 %v1557_v14, %v1316_v16  ;;  %v1748_v18 = vpop.f32.mrb[33].mxu1 }
0x14d6   :  { %v1319_v20 = vpop.f32.mrb[34].mxu1 }
0x14d7   :  { %1842 = vtanh.f32 %v1317_v17  ;;  %v1749_v21 = vpop.f32.mrb[35].mxu1 }
0x14d8   :  { %1844 = vtanh.f32 %v665_v19 }
0x14e1   :  { %v1843_v22 = vpop.eup %1842 }
0x14e2   :  { %1751 = vmatpush3.xpose.msk.msra.mxu1 %vm33_vm0, %v1843_v22  ;;  %v1845_v23 = vpop.eup %1844 }
0x14e5   :  { %1753 = vmatmul.mubr.msk.f32.vlgmr.msra.gmra.mrb[36].mxu1 %vm33_vm0, %v1845_v23 }
0x15b8   :  { %v1395_v25 = vpop.f32.mrb[36].mxu1 }
0x15b9   :  { %v1754_v26 = vpop.f32.mrb[37].mxu1  ;;  %v1400_v27 = vsel %vm1399_vm6, %v1395_v25, -inf }
0x15ba   :  { %1401 = vmax.xlane.f32.xlu0 %v1400_v27 }
0x1647   :  { %v1402_v28 = vpop.xlane.xlu0 %1401 }
0x1648   :  { %v1403_v29 = vsub.f32 %v1395_v25, %v1402_v28 }
0x164a   :  { %v1404_v30 = vmul.f32 1.442695, %v1403_v29 }
0x164c   :  { %1846 = vpow2.f32 %v1404_v30 }
0x1656   :  { %v1847_v24 = vpop.eup %1846 }
0x1657   :  { %v1406_v49 = vsel %vm1399_vm6, %v1847_v24, 0.0 }
0x1658   :  { %1407 = vadd.xlane.f32.xlu1 %v1406_v49 }
0x16e5   :  { %v1408_v31 = vpop.xlane.xlu1 %1407 }
0x16e6   :  { %1848 = vlog2.f32 %v1408_v31 }
0x16f0   :  { %v1849_v35 = vpop.eup %1848 }
0x16f1   :  { %v1410_v36 = vmul.f32 0.6931472, %v1849_v35 }
0x16f3   :  { %v1411_v38 = vsub.f32 %v1403_v29, %v1410_v36 }
0x16f5   :  { %v1419_v39 = vmul.f32 %v1563_v37, %v1411_v38 }
0x16f7   :  { %v1420_v40 = vsel %vm1399_vm6, %v1419_v39, 0.0 }
0x16f8   :  { %1421 = vadd.xlane.f32.xlu0 %v1420_v40 }
0x1785   :  { %v1422_v41 = vpop.xlane.xlu0 %1421 }
0x1786   :  { %v1423_v42 = vsub.f32 0.0, %v1422_v41 }
0x1788   :  { %v1425_v43 = vsel %vm1424_vm8, %v1423_v42, 0.0 }
0x1789   :  { %v1426_v44 = vrot.slane %v1425_v43, 4 }
0x178b   :  { %v1427_v45 = vadd.f32 %v1426_v44, %v1425_v43 }
0x178d   :  { %v1428_v46 = vrot.slane %v1427_v45, 2 }
0x178f   :  { %v1429_v63 = vadd.f32 %v1428_v46, %v1427_v45 }
0x1791   :  { %v1430_v47 = vrot.slane %v1429_v63, 1 }
0x1793   :  { %v1431_v48 = vadd.f32 %v1430_v47, %v1429_v63 }
0x1795   :  { %v1432_v50 = vmul.f32 0.5, %v1431_v48 }
0x1797   :  { %v1435_v52 = vsel %vm1434_vm9, %v1395_v25, %v1432_v50 }
0x1798   :  { %1437 = vst.msk [vmem:[%s2207_s4] sm:$0x3] %vm1436_vm10, %v1435_v52 }

</bundles_post_ra>
